<compile_context>
chip_gen: v7x
topology: tpu7x:2x2x1
jax: 0.10.0
libtpu: 0.0.40
codegen_flags: <defaults>
</compile_context>

<pallas_src>
import numpy as np
import jax
import jax.numpy as jnp
from jax import lax
from jax.experimental import pallas as pl
from jax.experimental.pallas import tpu as pltpu

# ---- Config (mirrors TPN/models.py defaults, scaled small & lane-friendly) --
OBS_LEN = 4
PRED_LEN = 4
SEQ_LEN = OBS_LEN + PRED_LEN
EMB_DIM = 32           # embedding_dim
H_DIM = 32             # h_dim
MLP_DIM = 128          # mlp_dim (real_classifier hidden width, lane-dense)
BN_EPS = 1e-5          # nn.BatchNorm1d default eps
LEAKY_SLOPE = 0.01     # nn.LeakyReLU default negative_slope


def _sigmoid(z):
    return 1.0 / (1.0 + jnp.exp(-z))


def _discriminator_kernel(x_ref, we_ref, be_ref, wih_ref, bg_ref, whh_ref,
                          w1_ref, b1_ref, g1_ref, bt1_ref,
                          w2_ref, b2_ref, g2_ref, bt2_ref, o_ref):
    B = o_ref.shape[0]
    S = x_ref.shape[0] // B
    H = whh_ref.shape[0]

    # ---- Encoder: spatial embedding + LSTM input-gate precompute -----------
    # Both computed for all S timesteps at once (two well-shaped matmuls,
    # default MXU precision, f32 accumulation).
    x = x_ref[...]                                                  # (S*B, 2)
    emb = jnp.dot(x, we_ref[...],
                  preferred_element_type=jnp.float32) + be_ref[...]  # (S*B, E)
    gates_in = jnp.dot(emb, wih_ref[...],
                       preferred_element_type=jnp.float32) + bg_ref[...]  # (S*B, 4H)

    whh = whh_ref[...]                                              # (H, 4H)
    h = jnp.zeros((B, H), jnp.float32)
    c = jnp.zeros((B, H), jnp.float32)
    # Sequential LSTM recurrence (inherently serial).  S is small and static,
    # so a fully-unrolled loop keeps live ranges tiny and the scheduler happy.
    for t in range(S):
        g = gates_in[t * B:(t + 1) * B, :] + jnp.dot(
            h, whh, preferred_element_type=jnp.float32)             # (B, 4H)
        i_g = _sigmoid(g[:, 0:H])
        f_g = _sigmoid(g[:, H:2 * H])
        c_g = jnp.tanh(g[:, 2 * H:3 * H])
        o_g = _sigmoid(g[:, 3 * H:4 * H])
        c = f_g * c + i_g * c_g
        h = o_g * jnp.tanh(c)

    # ---- real_classifier ----------------------------------------------------
    # Linear(H, MLP)
    y1 = jnp.dot(h, w1_ref[...],
                 preferred_element_type=jnp.float32) + b1_ref[...]   # (B, MLP)
    # BatchNorm1d(MLP): batch stats, biased variance
    m1 = jnp.mean(y1, axis=0, keepdims=True)
    v1 = jnp.mean((y1 - m1) ** 2, axis=0, keepdims=True)
    y1 = (y1 - m1) * lax.rsqrt(v1 + BN_EPS) * g1_ref[...] + bt1_ref[...]
    # LeakyReLU
    y1 = jnp.where(y1 > 0, y1, LEAKY_SLOPE * y1)
    # Linear(MLP, 1) as VPU multiply + lane reduction (w2 kept lane-dense)
    y2 = jnp.sum(y1 * w2_ref[...], axis=-1, keepdims=True) + b2_ref[...]  # (B, 1)
    # BatchNorm1d(1)
    m2 = jnp.mean(y2, axis=0, keepdims=True)
    v2 = jnp.mean((y2 - m2) ** 2, axis=0, keepdims=True)
    y2 = (y2 - m2) * lax.rsqrt(v2 + BN_EPS) * g2_ref[...] + bt2_ref[...]
    # Sigmoid -> scores
    o_ref[...] = _sigmoid(y2)


def trajectory_discriminator_forward(traj, traj_rel, params, seq_start_end=None):
    """traj, traj_rel: (seq_len, batch, 2).  d_type='local', so traj and
    seq_start_end do not affect the output (kept for signature parity)."""
    del traj, seq_start_end
    S, B, _ = traj_rel.shape
    x = traj_rel.reshape(S * B, 2).astype(jnp.float32)     # == .view(-1, 2)

    we = params["we"].astype(jnp.float32)                          # (2, E)
    be = params["be"].reshape(1, -1).astype(jnp.float32)           # (1, E)
    wih_t = params["wih_t"].astype(jnp.float32)                    # (E, 4H)
    b_gates = (params["b_ih"] + params["b_hh"]).reshape(1, -1).astype(jnp.float32)
    whh_t = params["whh_t"].astype(jnp.float32)                    # (H, 4H)
    w1_t = params["w1_t"].astype(jnp.float32)                      # (H, MLP)
    b1 = params["b1"].reshape(1, -1).astype(jnp.float32)
    gamma1 = params["gamma1"].reshape(1, -1).astype(jnp.float32)
    beta1 = params["beta1"].reshape(1, -1).astype(jnp.float32)
    w2_row = params["w2"].reshape(1, -1).astype(jnp.float32)       # (1, MLP)
    b2 = params["b2"].reshape(1, 1).astype(jnp.float32)
    gamma2 = params["gamma2"].reshape(1, 1).astype(jnp.float32)
    beta2 = params["beta2"].reshape(1, 1).astype(jnp.float32)

    args = (x, we, be, wih_t, b_gates, whh_t,
            w1_t, b1, gamma1, beta1, w2_row, b2, gamma2, beta2)
    in_specs = [pl.BlockSpec(a.shape, lambda i: (0, 0)) for a in args]

    return pl.pallas_call(
        _discriminator_kernel,
        out_shape=jax.ShapeDtypeStruct((B, 1), jnp.float32),
        grid=(1,),
        in_specs=in_specs,
        out_specs=pl.BlockSpec((B, 1), lambda i: (0, 0)),
        compiler_params=pltpu.CompilerParams(
            dimension_semantics=("arbitrary",)),
    )(*args)


def _reference_forward(traj_rel, params):
    """Faithful numpy port of the PyTorch forward (d_type='local')."""
    S, B, _ = traj_rel.shape
    H = H_DIM

    def sig(z):
        return 1.0 / (1.0 + np.exp(-z))

    x = traj_rel.reshape(S * B, 2).astype(np.float64)
    emb = x @ params["we"] + params["be"]
    gates_in = emb @ params["wih_t"] + params["b_ih"] + params["b_hh"]
    h = np.zeros((B, H), np.float64)
    c = np.zeros((B, H), np.float64)
    for t in range(S):
        g = gates_in[t * B:(t + 1) * B] + h @ params["whh_t"]
        i_g = sig(g[:, 0:H])
        f_g = sig(g[:, H:2 * H])
        c_g = np.tanh(g[:, 2 * H:3 * H])
        o_g = sig(g[:, 3 * H:4 * H])
        c = f_g * c + i_g * c_g
        h = o_g * np.tanh(c)

    y1 = h @ params["w1_t"] + params["b1"]
    m = y1.mean(0, keepdims=True)
    v = ((y1 - m) ** 2).mean(0, keepdims=True)
    y1 = (y1 - m) / np.sqrt(v + BN_EPS) * params["gamma1"] + params["beta1"]
    y1 = np.where(y1 > 0, y1, LEAKY_SLOPE * y1)
    y2 = (y1 * params["w2"][None, :]).sum(-1, keepdims=True) + params["b2"]
    m = y2.mean(0, keepdims=True)
    v = ((y2 - m) ** 2).mean(0, keepdims=True)
    y2 = (y2 - m) / np.sqrt(v + BN_EPS) * params["gamma2"] + params["beta2"]
    return sig(y2)


if __name__ == "__main__":
    key = jax.random.PRNGKey(0)
    ks = jax.random.split(key, 12)

    BATCH = 8
    traj = jax.random.normal(ks[0], (SEQ_LEN, BATCH, 2), jnp.float32)
    traj_rel = jax.random.normal(ks[1], (SEQ_LEN, BATCH, 2), jnp.float32)

    params = {
        # spatial_embedding Linear(2, E)
        "we": 0.2 * jax.random.normal(ks[2], (2, EMB_DIM), jnp.float32),
        "be": 0.1 * jax.random.normal(ks[3], (EMB_DIM,), jnp.float32),
        # LSTM(E, H): weights stored pre-transposed, gate order [i, f, g, o]
        "wih_t": 0.2 * jax.random.normal(ks[4], (EMB_DIM, 4 * H_DIM), jnp.float32),
        "whh_t": 0.2 * jax.random.normal(ks[5], (H_DIM, 4 * H_DIM), jnp.float32),
        "b_ih": 0.1 * jax.random.normal(ks[6], (4 * H_DIM,), jnp.float32),
        "b_hh": 0.1 * jax.random.normal(ks[7], (4 * H_DIM,), jnp.float32),
        # real_classifier Linear(H, MLP) + BatchNorm1d(MLP)
        "w1_t": 0.1 * jax.random.normal(ks[8], (H_DIM, MLP_DIM), jnp.float32),
        "b1": 0.1 * jax.random.normal(ks[9], (MLP_DIM,), jnp.float32),
        "gamma1": jnp.ones((MLP_DIM,), jnp.float32),
        "beta1": jnp.zeros((MLP_DIM,), jnp.float32),
        # real_classifier Linear(MLP, 1) + BatchNorm1d(1)
        "w2": 0.1 * jax.random.normal(ks[10], (MLP_DIM,), jnp.float32),
        "b2": 0.1 * jax.random.normal(ks[11], (1,), jnp.float32),
        "gamma2": jnp.ones((1,), jnp.float32),
        "beta2": jnp.zeros((1,), jnp.float32),
    }

    out = trajectory_discriminator_forward(traj, traj_rel, params)
    out = jax.block_until_ready(out)

    ref = _reference_forward(
        np.asarray(traj_rel), {k: np.asarray(v) for k, v in params.items()})
    assert out.shape == (BATCH, 1)
    np.testing.assert_allclose(np.asarray(out), ref, rtol=2e-2, atol=2e-2)
    print("KERNEL_OK")
</pallas_src>

<mosaic_0001>
module attributes {stable_mosaic.version = 11 : i64} {
  func.func @_discriminator_kernel(%arg0: i32, %arg1: memref<64x2xf32, #tpu.memory_space<vmem>>, %arg2: memref<2x32xf32, #tpu.memory_space<vmem>>, %arg3: memref<1x32xf32, #tpu.memory_space<vmem>>, %arg4: memref<32x128xf32, #tpu.memory_space<vmem>>, %arg5: memref<1x128xf32, #tpu.memory_space<vmem>>, %arg6: memref<32x128xf32, #tpu.memory_space<vmem>>, %arg7: memref<32x128xf32, #tpu.memory_space<vmem>>, %arg8: memref<1x128xf32, #tpu.memory_space<vmem>>, %arg9: memref<1x128xf32, #tpu.memory_space<vmem>>, %arg10: memref<1x128xf32, #tpu.memory_space<vmem>>, %arg11: memref<1x128xf32, #tpu.memory_space<vmem>>, %arg12: memref<1x1xf32, #tpu.memory_space<vmem>>, %arg13: memref<1x1xf32, #tpu.memory_space<vmem>>, %arg14: memref<1x1xf32, #tpu.memory_space<vmem>>, %arg15: memref<8x1xf32, #tpu.memory_space<vmem>>) attributes {dimension_semantics = [#tpu.dimension_semantics<arbitrary>], iteration_bounds = array<i64: 1>, scalar_prefetch = 0 : i64, scratch_operands = 0 : i64, tpu.core_type = #tpu.core_type<tc>, window_params = [{pipeline_mode = #tpu.pipeline_mode<synchronous>, transform_indices = @transform_0, window_bounds = array<i64: 64, 2>}, {pipeline_mode = #tpu.pipeline_mode<synchronous>, transform_indices = @transform_1, window_bounds = array<i64: 2, 32>}, {pipeline_mode = #tpu.pipeline_mode<synchronous>, transform_indices = @transform_2, window_bounds = array<i64: 1, 32>}, {pipeline_mode = #tpu.pipeline_mode<synchronous>, transform_indices = @transform_3, window_bounds = array<i64: 32, 128>}, {pipeline_mode = #tpu.pipeline_mode<synchronous>, transform_indices = @transform_4, window_bounds = array<i64: 1, 128>}, {pipeline_mode = #tpu.pipeline_mode<synchronous>, transform_indices = @transform_5, window_bounds = array<i64: 32, 128>}, {pipeline_mode = #tpu.pipeline_mode<synchronous>, transform_indices = @transform_6, window_bounds = array<i64: 32, 128>}, {pipeline_mode = #tpu.pipeline_mode<synchronous>, transform_indices = @transform_7, window_bounds = array<i64: 1, 128>}, {pipeline_mode = #tpu.pipeline_mode<synchronous>, transform_indices = @transform_8, window_bounds = array<i64: 1, 128>}, {pipeline_mode = #tpu.pipeline_mode<synchronous>, transform_indices = @transform_9, window_bounds = array<i64: 1, 128>}, {pipeline_mode = #tpu.pipeline_mode<synchronous>, transform_indices = @transform_10, window_bounds = array<i64: 1, 128>}, {pipeline_mode = #tpu.pipeline_mode<synchronous>, transform_indices = @transform_11, window_bounds = array<i64: 1, 1>}, {pipeline_mode = #tpu.pipeline_mode<synchronous>, transform_indices = @transform_12, window_bounds = array<i64: 1, 1>}, {pipeline_mode = #tpu.pipeline_mode<synchronous>, transform_indices = @transform_13, window_bounds = array<i64: 1, 1>}, {pipeline_mode = #tpu.pipeline_mode<synchronous>, transform_indices = @transform_14, window_bounds = array<i64: 8, 1>}]} {
    %c0 = arith.constant 0 : index
    %c0_0 = arith.constant 0 : index
    %0 = vector.load %arg1[%c0, %c0_0] : memref<64x2xf32, #tpu.memory_space<vmem>>, vector<64x2xf32>
    %c0_1 = arith.constant 0 : index
    %c0_2 = arith.constant 0 : index
    %1 = vector.load %arg2[%c0_1, %c0_2] : memref<2x32xf32, #tpu.memory_space<vmem>>, vector<2x32xf32>
    %cst = arith.constant dense<0.000000e+00> : vector<64x32xf32>
    %2 = tpu.matmul %0, %1, %cst {dimension_numbers = #tpu.dot_dimension_numbers<[1], [0], [0], [1], [0, 0, 1, 1], [], []>} : vector<64x2xf32>, vector<2x32xf32>, vector<64x32xf32> -> vector<64x32xf32>
    %c0_3 = arith.constant 0 : index
    %c0_4 = arith.constant 0 : index
    %3 = vector.load %arg3[%c0_3, %c0_4] : memref<1x32xf32, #tpu.memory_space<vmem>>, vector<1x32xf32>
    %4 = vector.broadcast %3 : vector<1x32xf32> to vector<64x32xf32>
    %5 = arith.addf %2, %4 : vector<64x32xf32>
    %c0_5 = arith.constant 0 : index
    %c0_6 = arith.constant 0 : index
    %6 = vector.load %arg4[%c0_5, %c0_6] : memref<32x128xf32, #tpu.memory_space<vmem>>, vector<32x128xf32>
    %cst_7 = arith.constant dense<0.000000e+00> : vector<64x128xf32>
    %7 = tpu.matmul %5, %6, %cst_7 {dimension_numbers = #tpu.dot_dimension_numbers<[1], [0], [0], [1], [0, 0, 1, 1], [], []>} : vector<64x32xf32>, vector<32x128xf32>, vector<64x128xf32> -> vector<64x128xf32>
    %c0_8 = arith.constant 0 : index
    %c0_9 = arith.constant 0 : index
    %8 = vector.load %arg5[%c0_8, %c0_9] : memref<1x128xf32, #tpu.memory_space<vmem>>, vector<1x128xf32>
    %9 = vector.broadcast %8 : vector<1x128xf32> to vector<64x128xf32>
    %10 = arith.addf %7, %9 : vector<64x128xf32>
    %c0_10 = arith.constant 0 : index
    %c0_11 = arith.constant 0 : index
    %11 = vector.load %arg6[%c0_10, %c0_11] : memref<32x128xf32, #tpu.memory_space<vmem>>, vector<32x128xf32>
    %cst_12 = arith.constant 0.000000e+00 : f32
    %12 = vector.broadcast %cst_12 : f32 to vector<8x32xf32>
    %cst_13 = arith.constant 0.000000e+00 : f32
    %13 = vector.broadcast %cst_13 : f32 to vector<8x32xf32>
    %14 = vector.extract_strided_slice %10 {offsets = [0, 0], sizes = [8, 128], strides = [1, 1]} : vector<64x128xf32> to vector<8x128xf32>
    %cst_14 = arith.constant dense<0.000000e+00> : vector<8x128xf32>
    %15 = tpu.matmul %12, %11, %cst_14 {dimension_numbers = #tpu.dot_dimension_numbers<[1], [0], [0], [1], [0, 0, 1, 1], [], []>} : vector<8x32xf32>, vector<32x128xf32>, vector<8x128xf32> -> vector<8x128xf32>
    %16 = arith.addf %14, %15 : vector<8x128xf32>
    %17 = vector.extract_strided_slice %16 {offsets = [0, 0], sizes = [8, 32], strides = [1, 1]} : vector<8x128xf32> to vector<8x32xf32>
    %cst_15 = arith.constant 0.000000e+00 : f32
    %18 = vector.broadcast %cst_15 : f32 to vector<8x32xf32>
    %19 = arith.subf %18, %17 : vector<8x32xf32>
    %20 = math.exp %19 : vector<8x32xf32>
    %cst_16 = arith.constant 1.000000e+00 : f32
    %21 = vector.broadcast %cst_16 : f32 to vector<8x32xf32>
    %22 = arith.addf %21, %20 : vector<8x32xf32>
    %cst_17 = arith.constant 1.000000e+00 : f32
    %23 = vector.broadcast %cst_17 : f32 to vector<8x32xf32>
    %24 = arith.divf %23, %22 : vector<8x32xf32>
    %25 = vector.extract_strided_slice %16 {offsets = [0, 32], sizes = [8, 32], strides = [1, 1]} : vector<8x128xf32> to vector<8x32xf32>
    %cst_18 = arith.constant 0.000000e+00 : f32
    %26 = vector.broadcast %cst_18 : f32 to vector<8x32xf32>
    %27 = arith.subf %26, %25 : vector<8x32xf32>
    %28 = math.exp %27 : vector<8x32xf32>
    %cst_19 = arith.constant 1.000000e+00 : f32
    %29 = vector.broadcast %cst_19 : f32 to vector<8x32xf32>
    %30 = arith.addf %29, %28 : vector<8x32xf32>
    %cst_20 = arith.constant 1.000000e+00 : f32
    %31 = vector.broadcast %cst_20 : f32 to vector<8x32xf32>
    %32 = arith.divf %31, %30 : vector<8x32xf32>
    %33 = vector.extract_strided_slice %16 {offsets = [0, 64], sizes = [8, 32], strides = [1, 1]} : vector<8x128xf32> to vector<8x32xf32>
    %34 = math.tanh %33 : vector<8x32xf32>
    %35 = vector.extract_strided_slice %16 {offsets = [0, 96], sizes = [8, 32], strides = [1, 1]} : vector<8x128xf32> to vector<8x32xf32>
    %cst_21 = arith.constant 0.000000e+00 : f32
    %36 = vector.broadcast %cst_21 : f32 to vector<8x32xf32>
    %37 = arith.subf %36, %35 : vector<8x32xf32>
    %38 = math.exp %37 : vector<8x32xf32>
    %cst_22 = arith.constant 1.000000e+00 : f32
    %39 = vector.broadcast %cst_22 : f32 to vector<8x32xf32>
    %40 = arith.addf %39, %38 : vector<8x32xf32>
    %cst_23 = arith.constant 1.000000e+00 : f32
    %41 = vector.broadcast %cst_23 : f32 to vector<8x32xf32>
    %42 = arith.divf %41, %40 : vector<8x32xf32>
    %43 = arith.mulf %32, %13 : vector<8x32xf32>
    %44 = arith.mulf %24, %34 : vector<8x32xf32>
    %45 = arith.addf %43, %44 : vector<8x32xf32>
    %46 = math.tanh %45 : vector<8x32xf32>
    %47 = arith.mulf %42, %46 : vector<8x32xf32>
    %48 = vector.extract_strided_slice %10 {offsets = [8, 0], sizes = [8, 128], strides = [1, 1]} : vector<64x128xf32> to vector<8x128xf32>
    %cst_24 = arith.constant dense<0.000000e+00> : vector<8x128xf32>
    %49 = tpu.matmul %47, %11, %cst_24 {dimension_numbers = #tpu.dot_dimension_numbers<[1], [0], [0], [1], [0, 0, 1, 1], [], []>} : vector<8x32xf32>, vector<32x128xf32>, vector<8x128xf32> -> vector<8x128xf32>
    %50 = arith.addf %48, %49 : vector<8x128xf32>
    %51 = vector.extract_strided_slice %50 {offsets = [0, 0], sizes = [8, 32], strides = [1, 1]} : vector<8x128xf32> to vector<8x32xf32>
    %cst_25 = arith.constant 0.000000e+00 : f32
    %52 = vector.broadcast %cst_25 : f32 to vector<8x32xf32>
    %53 = arith.subf %52, %51 : vector<8x32xf32>
    %54 = math.exp %53 : vector<8x32xf32>
    %cst_26 = arith.constant 1.000000e+00 : f32
    %55 = vector.broadcast %cst_26 : f32 to vector<8x32xf32>
    %56 = arith.addf %55, %54 : vector<8x32xf32>
    %cst_27 = arith.constant 1.000000e+00 : f32
    %57 = vector.broadcast %cst_27 : f32 to vector<8x32xf32>
    %58 = arith.divf %57, %56 : vector<8x32xf32>
    %59 = vector.extract_strided_slice %50 {offsets = [0, 32], sizes = [8, 32], strides = [1, 1]} : vector<8x128xf32> to vector<8x32xf32>
    %cst_28 = arith.constant 0.000000e+00 : f32
    %60 = vector.broadcast %cst_28 : f32 to vector<8x32xf32>
    %61 = arith.subf %60, %59 : vector<8x32xf32>
    %62 = math.exp %61 : vector<8x32xf32>
    %cst_29 = arith.constant 1.000000e+00 : f32
    %63 = vector.broadcast %cst_29 : f32 to vector<8x32xf32>
    %64 = arith.addf %63, %62 : vector<8x32xf32>
    %cst_30 = arith.constant 1.000000e+00 : f32
    %65 = vector.broadcast %cst_30 : f32 to vector<8x32xf32>
    %66 = arith.divf %65, %64 : vector<8x32xf32>
    %67 = vector.extract_strided_slice %50 {offsets = [0, 64], sizes = [8, 32], strides = [1, 1]} : vector<8x128xf32> to vector<8x32xf32>
    %68 = math.tanh %67 : vector<8x32xf32>
    %69 = vector.extract_strided_slice %50 {offsets = [0, 96], sizes = [8, 32], strides = [1, 1]} : vector<8x128xf32> to vector<8x32xf32>
    %cst_31 = arith.constant 0.000000e+00 : f32
    %70 = vector.broadcast %cst_31 : f32 to vector<8x32xf32>
    %71 = arith.subf %70, %69 : vector<8x32xf32>
    %72 = math.exp %71 : vector<8x32xf32>
    %cst_32 = arith.constant 1.000000e+00 : f32
    %73 = vector.broadcast %cst_32 : f32 to vector<8x32xf32>
    %74 = arith.addf %73, %72 : vector<8x32xf32>
    %cst_33 = arith.constant 1.000000e+00 : f32
    %75 = vector.broadcast %cst_33 : f32 to vector<8x32xf32>
    %76 = arith.divf %75, %74 : vector<8x32xf32>
    %77 = arith.mulf %66, %45 : vector<8x32xf32>
    %78 = arith.mulf %58, %68 : vector<8x32xf32>
    %79 = arith.addf %77, %78 : vector<8x32xf32>
    %80 = math.tanh %79 : vector<8x32xf32>
    %81 = arith.mulf %76, %80 : vector<8x32xf32>
    %82 = vector.extract_strided_slice %10 {offsets = [16, 0], sizes = [8, 128], strides = [1, 1]} : vector<64x128xf32> to vector<8x128xf32>
    %cst_34 = arith.constant dense<0.000000e+00> : vector<8x128xf32>
    %83 = tpu.matmul %81, %11, %cst_34 {dimension_numbers = #tpu.dot_dimension_numbers<[1], [0], [0], [1], [0, 0, 1, 1], [], []>} : vector<8x32xf32>, vector<32x128xf32>, vector<8x128xf32> -> vector<8x128xf32>
    %84 = arith.addf %82, %83 : vector<8x128xf32>
    %85 = vector.extract_strided_slice %84 {offsets = [0, 0], sizes = [8, 32], strides = [1, 1]} : vector<8x128xf32> to vector<8x32xf32>
    %cst_35 = arith.constant 0.000000e+00 : f32
    %86 = vector.broadcast %cst_35 : f32 to vector<8x32xf32>
    %87 = arith.subf %86, %85 : vector<8x32xf32>
    %88 = math.exp %87 : vector<8x32xf32>
    %cst_36 = arith.constant 1.000000e+00 : f32
    %89 = vector.broadcast %cst_36 : f32 to vector<8x32xf32>
    %90 = arith.addf %89, %88 : vector<8x32xf32>
    %cst_37 = arith.constant 1.000000e+00 : f32
    %91 = vector.broadcast %cst_37 : f32 to vector<8x32xf32>
    %92 = arith.divf %91, %90 : vector<8x32xf32>
    %93 = vector.extract_strided_slice %84 {offsets = [0, 32], sizes = [8, 32], strides = [1, 1]} : vector<8x128xf32> to vector<8x32xf32>
    %cst_38 = arith.constant 0.000000e+00 : f32
    %94 = vector.broadcast %cst_38 : f32 to vector<8x32xf32>
    %95 = arith.subf %94, %93 : vector<8x32xf32>
    %96 = math.exp %95 : vector<8x32xf32>
    %cst_39 = arith.constant 1.000000e+00 : f32
    %97 = vector.broadcast %cst_39 : f32 to vector<8x32xf32>
    %98 = arith.addf %97, %96 : vector<8x32xf32>
    %cst_40 = arith.constant 1.000000e+00 : f32
    %99 = vector.broadcast %cst_40 : f32 to vector<8x32xf32>
    %100 = arith.divf %99, %98 : vector<8x32xf32>
    %101 = vector.extract_strided_slice %84 {offsets = [0, 64], sizes = [8, 32], strides = [1, 1]} : vector<8x128xf32> to vector<8x32xf32>
    %102 = math.tanh %101 : vector<8x32xf32>
    %103 = vector.extract_strided_slice %84 {offsets = [0, 96], sizes = [8, 32], strides = [1, 1]} : vector<8x128xf32> to vector<8x32xf32>
    %cst_41 = arith.constant 0.000000e+00 : f32
    %104 = vector.broadcast %cst_41 : f32 to vector<8x32xf32>
    %105 = arith.subf %104, %103 : vector<8x32xf32>
    %106 = math.exp %105 : vector<8x32xf32>
    %cst_42 = arith.constant 1.000000e+00 : f32
    %107 = vector.broadcast %cst_42 : f32 to vector<8x32xf32>
    %108 = arith.addf %107, %106 : vector<8x32xf32>
    %cst_43 = arith.constant 1.000000e+00 : f32
    %109 = vector.broadcast %cst_43 : f32 to vector<8x32xf32>
    %110 = arith.divf %109, %108 : vector<8x32xf32>
    %111 = arith.mulf %100, %79 : vector<8x32xf32>
    %112 = arith.mulf %92, %102 : vector<8x32xf32>
    %113 = arith.addf %111, %112 : vector<8x32xf32>
    %114 = math.tanh %113 : vector<8x32xf32>
    %115 = arith.mulf %110, %114 : vector<8x32xf32>
    %116 = vector.extract_strided_slice %10 {offsets = [24, 0], sizes = [8, 128], strides = [1, 1]} : vector<64x128xf32> to vector<8x128xf32>
    %cst_44 = arith.constant dense<0.000000e+00> : vector<8x128xf32>
    %117 = tpu.matmul %115, %11, %cst_44 {dimension_numbers = #tpu.dot_dimension_numbers<[1], [0], [0], [1], [0, 0, 1, 1], [], []>} : vector<8x32xf32>, vector<32x128xf32>, vector<8x128xf32> -> vector<8x128xf32>
    %118 = arith.addf %116, %117 : vector<8x128xf32>
    %119 = vector.extract_strided_slice %118 {offsets = [0, 0], sizes = [8, 32], strides = [1, 1]} : vector<8x128xf32> to vector<8x32xf32>
    %cst_45 = arith.constant 0.000000e+00 : f32
    %120 = vector.broadcast %cst_45 : f32 to vector<8x32xf32>
    %121 = arith.subf %120, %119 : vector<8x32xf32>
    %122 = math.exp %121 : vector<8x32xf32>
    %cst_46 = arith.constant 1.000000e+00 : f32
    %123 = vector.broadcast %cst_46 : f32 to vector<8x32xf32>
    %124 = arith.addf %123, %122 : vector<8x32xf32>
    %cst_47 = arith.constant 1.000000e+00 : f32
    %125 = vector.broadcast %cst_47 : f32 to vector<8x32xf32>
    %126 = arith.divf %125, %124 : vector<8x32xf32>
    %127 = vector.extract_strided_slice %118 {offsets = [0, 32], sizes = [8, 32], strides = [1, 1]} : vector<8x128xf32> to vector<8x32xf32>
    %cst_48 = arith.constant 0.000000e+00 : f32
    %128 = vector.broadcast %cst_48 : f32 to vector<8x32xf32>
    %129 = arith.subf %128, %127 : vector<8x32xf32>
    %130 = math.exp %129 : vector<8x32xf32>
    %cst_49 = arith.constant 1.000000e+00 : f32
    %131 = vector.broadcast %cst_49 : f32 to vector<8x32xf32>
    %132 = arith.addf %131, %130 : vector<8x32xf32>
    %cst_50 = arith.constant 1.000000e+00 : f32
    %133 = vector.broadcast %cst_50 : f32 to vector<8x32xf32>
    %134 = arith.divf %133, %132 : vector<8x32xf32>
    %135 = vector.extract_strided_slice %118 {offsets = [0, 64], sizes = [8, 32], strides = [1, 1]} : vector<8x128xf32> to vector<8x32xf32>
    %136 = math.tanh %135 : vector<8x32xf32>
    %137 = vector.extract_strided_slice %118 {offsets = [0, 96], sizes = [8, 32], strides = [1, 1]} : vector<8x128xf32> to vector<8x32xf32>
    %cst_51 = arith.constant 0.000000e+00 : f32
    %138 = vector.broadcast %cst_51 : f32 to vector<8x32xf32>
    %139 = arith.subf %138, %137 : vector<8x32xf32>
    %140 = math.exp %139 : vector<8x32xf32>
    %cst_52 = arith.constant 1.000000e+00 : f32
    %141 = vector.broadcast %cst_52 : f32 to vector<8x32xf32>
    %142 = arith.addf %141, %140 : vector<8x32xf32>
    %cst_53 = arith.constant 1.000000e+00 : f32
    %143 = vector.broadcast %cst_53 : f32 to vector<8x32xf32>
    %144 = arith.divf %143, %142 : vector<8x32xf32>
    %145 = arith.mulf %134, %113 : vector<8x32xf32>
    %146 = arith.mulf %126, %136 : vector<8x32xf32>
    %147 = arith.addf %145, %146 : vector<8x32xf32>
    %148 = math.tanh %147 : vector<8x32xf32>
    %149 = arith.mulf %144, %148 : vector<8x32xf32>
    %150 = vector.extract_strided_slice %10 {offsets = [32, 0], sizes = [8, 128], strides = [1, 1]} : vector<64x128xf32> to vector<8x128xf32>
    %cst_54 = arith.constant dense<0.000000e+00> : vector<8x128xf32>
    %151 = tpu.matmul %149, %11, %cst_54 {dimension_numbers = #tpu.dot_dimension_numbers<[1], [0], [0], [1], [0, 0, 1, 1], [], []>} : vector<8x32xf32>, vector<32x128xf32>, vector<8x128xf32> -> vector<8x128xf32>
    %152 = arith.addf %150, %151 : vector<8x128xf32>
    %153 = vector.extract_strided_slice %152 {offsets = [0, 0], sizes = [8, 32], strides = [1, 1]} : vector<8x128xf32> to vector<8x32xf32>
    %cst_55 = arith.constant 0.000000e+00 : f32
    %154 = vector.broadcast %cst_55 : f32 to vector<8x32xf32>
    %155 = arith.subf %154, %153 : vector<8x32xf32>
    %156 = math.exp %155 : vector<8x32xf32>
    %cst_56 = arith.constant 1.000000e+00 : f32
    %157 = vector.broadcast %cst_56 : f32 to vector<8x32xf32>
    %158 = arith.addf %157, %156 : vector<8x32xf32>
    %cst_57 = arith.constant 1.000000e+00 : f32
    %159 = vector.broadcast %cst_57 : f32 to vector<8x32xf32>
    %160 = arith.divf %159, %158 : vector<8x32xf32>
    %161 = vector.extract_strided_slice %152 {offsets = [0, 32], sizes = [8, 32], strides = [1, 1]} : vector<8x128xf32> to vector<8x32xf32>
    %cst_58 = arith.constant 0.000000e+00 : f32
    %162 = vector.broadcast %cst_58 : f32 to vector<8x32xf32>
    %163 = arith.subf %162, %161 : vector<8x32xf32>
    %164 = math.exp %163 : vector<8x32xf32>
    %cst_59 = arith.constant 1.000000e+00 : f32
    %165 = vector.broadcast %cst_59 : f32 to vector<8x32xf32>
    %166 = arith.addf %165, %164 : vector<8x32xf32>
    %cst_60 = arith.constant 1.000000e+00 : f32
    %167 = vector.broadcast %cst_60 : f32 to vector<8x32xf32>
    %168 = arith.divf %167, %166 : vector<8x32xf32>
    %169 = vector.extract_strided_slice %152 {offsets = [0, 64], sizes = [8, 32], strides = [1, 1]} : vector<8x128xf32> to vector<8x32xf32>
    %170 = math.tanh %169 : vector<8x32xf32>
    %171 = vector.extract_strided_slice %152 {offsets = [0, 96], sizes = [8, 32], strides = [1, 1]} : vector<8x128xf32> to vector<8x32xf32>
    %cst_61 = arith.constant 0.000000e+00 : f32
    %172 = vector.broadcast %cst_61 : f32 to vector<8x32xf32>
    %173 = arith.subf %172, %171 : vector<8x32xf32>
    %174 = math.exp %173 : vector<8x32xf32>
    %cst_62 = arith.constant 1.000000e+00 : f32
    %175 = vector.broadcast %cst_62 : f32 to vector<8x32xf32>
    %176 = arith.addf %175, %174 : vector<8x32xf32>
    %cst_63 = arith.constant 1.000000e+00 : f32
    %177 = vector.broadcast %cst_63 : f32 to vector<8x32xf32>
    %178 = arith.divf %177, %176 : vector<8x32xf32>
    %179 = arith.mulf %168, %147 : vector<8x32xf32>
    %180 = arith.mulf %160, %170 : vector<8x32xf32>
    %181 = arith.addf %179, %180 : vector<8x32xf32>
    %182 = math.tanh %181 : vector<8x32xf32>
    %183 = arith.mulf %178, %182 : vector<8x32xf32>
    %184 = vector.extract_strided_slice %10 {offsets = [40, 0], sizes = [8, 128], strides = [1, 1]} : vector<64x128xf32> to vector<8x128xf32>
    %cst_64 = arith.constant dense<0.000000e+00> : vector<8x128xf32>
    %185 = tpu.matmul %183, %11, %cst_64 {dimension_numbers = #tpu.dot_dimension_numbers<[1], [0], [0], [1], [0, 0, 1, 1], [], []>} : vector<8x32xf32>, vector<32x128xf32>, vector<8x128xf32> -> vector<8x128xf32>
    %186 = arith.addf %184, %185 : vector<8x128xf32>
    %187 = vector.extract_strided_slice %186 {offsets = [0, 0], sizes = [8, 32], strides = [1, 1]} : vector<8x128xf32> to vector<8x32xf32>
    %cst_65 = arith.constant 0.000000e+00 : f32
    %188 = vector.broadcast %cst_65 : f32 to vector<8x32xf32>
    %189 = arith.subf %188, %187 : vector<8x32xf32>
    %190 = math.exp %189 : vector<8x32xf32>
    %cst_66 = arith.constant 1.000000e+00 : f32
    %191 = vector.broadcast %cst_66 : f32 to vector<8x32xf32>
    %192 = arith.addf %191, %190 : vector<8x32xf32>
    %cst_67 = arith.constant 1.000000e+00 : f32
    %193 = vector.broadcast %cst_67 : f32 to vector<8x32xf32>
    %194 = arith.divf %193, %192 : vector<8x32xf32>
    %195 = vector.extract_strided_slice %186 {offsets = [0, 32], sizes = [8, 32], strides = [1, 1]} : vector<8x128xf32> to vector<8x32xf32>
    %cst_68 = arith.constant 0.000000e+00 : f32
    %196 = vector.broadcast %cst_68 : f32 to vector<8x32xf32>
    %197 = arith.subf %196, %195 : vector<8x32xf32>
    %198 = math.exp %197 : vector<8x32xf32>
    %cst_69 = arith.constant 1.000000e+00 : f32
    %199 = vector.broadcast %cst_69 : f32 to vector<8x32xf32>
    %200 = arith.addf %199, %198 : vector<8x32xf32>
    %cst_70 = arith.constant 1.000000e+00 : f32
    %201 = vector.broadcast %cst_70 : f32 to vector<8x32xf32>
    %202 = arith.divf %201, %200 : vector<8x32xf32>
    %203 = vector.extract_strided_slice %186 {offsets = [0, 64], sizes = [8, 32], strides = [1, 1]} : vector<8x128xf32> to vector<8x32xf32>
    %204 = math.tanh %203 : vector<8x32xf32>
    %205 = vector.extract_strided_slice %186 {offsets = [0, 96], sizes = [8, 32], strides = [1, 1]} : vector<8x128xf32> to vector<8x32xf32>
    %cst_71 = arith.constant 0.000000e+00 : f32
    %206 = vector.broadcast %cst_71 : f32 to vector<8x32xf32>
    %207 = arith.subf %206, %205 : vector<8x32xf32>
    %208 = math.exp %207 : vector<8x32xf32>
    %cst_72 = arith.constant 1.000000e+00 : f32
    %209 = vector.broadcast %cst_72 : f32 to vector<8x32xf32>
    %210 = arith.addf %209, %208 : vector<8x32xf32>
    %cst_73 = arith.constant 1.000000e+00 : f32
    %211 = vector.broadcast %cst_73 : f32 to vector<8x32xf32>
    %212 = arith.divf %211, %210 : vector<8x32xf32>
    %213 = arith.mulf %202, %181 : vector<8x32xf32>
    %214 = arith.mulf %194, %204 : vector<8x32xf32>
    %215 = arith.addf %213, %214 : vector<8x32xf32>
    %216 = math.tanh %215 : vector<8x32xf32>
    %217 = arith.mulf %212, %216 : vector<8x32xf32>
    %218 = vector.extract_strided_slice %10 {offsets = [48, 0], sizes = [8, 128], strides = [1, 1]} : vector<64x128xf32> to vector<8x128xf32>
    %cst_74 = arith.constant dense<0.000000e+00> : vector<8x128xf32>
    %219 = tpu.matmul %217, %11, %cst_74 {dimension_numbers = #tpu.dot_dimension_numbers<[1], [0], [0], [1], [0, 0, 1, 1], [], []>} : vector<8x32xf32>, vector<32x128xf32>, vector<8x128xf32> -> vector<8x128xf32>
    %220 = arith.addf %218, %219 : vector<8x128xf32>
    %221 = vector.extract_strided_slice %220 {offsets = [0, 0], sizes = [8, 32], strides = [1, 1]} : vector<8x128xf32> to vector<8x32xf32>
    %cst_75 = arith.constant 0.000000e+00 : f32
    %222 = vector.broadcast %cst_75 : f32 to vector<8x32xf32>
    %223 = arith.subf %222, %221 : vector<8x32xf32>
    %224 = math.exp %223 : vector<8x32xf32>
    %cst_76 = arith.constant 1.000000e+00 : f32
    %225 = vector.broadcast %cst_76 : f32 to vector<8x32xf32>
    %226 = arith.addf %225, %224 : vector<8x32xf32>
    %cst_77 = arith.constant 1.000000e+00 : f32
    %227 = vector.broadcast %cst_77 : f32 to vector<8x32xf32>
    %228 = arith.divf %227, %226 : vector<8x32xf32>
    %229 = vector.extract_strided_slice %220 {offsets = [0, 32], sizes = [8, 32], strides = [1, 1]} : vector<8x128xf32> to vector<8x32xf32>
    %cst_78 = arith.constant 0.000000e+00 : f32
    %230 = vector.broadcast %cst_78 : f32 to vector<8x32xf32>
    %231 = arith.subf %230, %229 : vector<8x32xf32>
    %232 = math.exp %231 : vector<8x32xf32>
    %cst_79 = arith.constant 1.000000e+00 : f32
    %233 = vector.broadcast %cst_79 : f32 to vector<8x32xf32>
    %234 = arith.addf %233, %232 : vector<8x32xf32>
    %cst_80 = arith.constant 1.000000e+00 : f32
    %235 = vector.broadcast %cst_80 : f32 to vector<8x32xf32>
    %236 = arith.divf %235, %234 : vector<8x32xf32>
    %237 = vector.extract_strided_slice %220 {offsets = [0, 64], sizes = [8, 32], strides = [1, 1]} : vector<8x128xf32> to vector<8x32xf32>
    %238 = math.tanh %237 : vector<8x32xf32>
    %239 = vector.extract_strided_slice %220 {offsets = [0, 96], sizes = [8, 32], strides = [1, 1]} : vector<8x128xf32> to vector<8x32xf32>
    %cst_81 = arith.constant 0.000000e+00 : f32
    %240 = vector.broadcast %cst_81 : f32 to vector<8x32xf32>
    %241 = arith.subf %240, %239 : vector<8x32xf32>
    %242 = math.exp %241 : vector<8x32xf32>
    %cst_82 = arith.constant 1.000000e+00 : f32
    %243 = vector.broadcast %cst_82 : f32 to vector<8x32xf32>
    %244 = arith.addf %243, %242 : vector<8x32xf32>
    %cst_83 = arith.constant 1.000000e+00 : f32
    %245 = vector.broadcast %cst_83 : f32 to vector<8x32xf32>
    %246 = arith.divf %245, %244 : vector<8x32xf32>
    %247 = arith.mulf %236, %215 : vector<8x32xf32>
    %248 = arith.mulf %228, %238 : vector<8x32xf32>
    %249 = arith.addf %247, %248 : vector<8x32xf32>
    %250 = math.tanh %249 : vector<8x32xf32>
    %251 = arith.mulf %246, %250 : vector<8x32xf32>
    %252 = vector.extract_strided_slice %10 {offsets = [56, 0], sizes = [8, 128], strides = [1, 1]} : vector<64x128xf32> to vector<8x128xf32>
    %cst_84 = arith.constant dense<0.000000e+00> : vector<8x128xf32>
    %253 = tpu.matmul %251, %11, %cst_84 {dimension_numbers = #tpu.dot_dimension_numbers<[1], [0], [0], [1], [0, 0, 1, 1], [], []>} : vector<8x32xf32>, vector<32x128xf32>, vector<8x128xf32> -> vector<8x128xf32>
    %254 = arith.addf %252, %253 : vector<8x128xf32>
    %255 = vector.extract_strided_slice %254 {offsets = [0, 0], sizes = [8, 32], strides = [1, 1]} : vector<8x128xf32> to vector<8x32xf32>
    %cst_85 = arith.constant 0.000000e+00 : f32
    %256 = vector.broadcast %cst_85 : f32 to vector<8x32xf32>
    %257 = arith.subf %256, %255 : vector<8x32xf32>
    %258 = math.exp %257 : vector<8x32xf32>
    %cst_86 = arith.constant 1.000000e+00 : f32
    %259 = vector.broadcast %cst_86 : f32 to vector<8x32xf32>
    %260 = arith.addf %259, %258 : vector<8x32xf32>
    %cst_87 = arith.constant 1.000000e+00 : f32
    %261 = vector.broadcast %cst_87 : f32 to vector<8x32xf32>
    %262 = arith.divf %261, %260 : vector<8x32xf32>
    %263 = vector.extract_strided_slice %254 {offsets = [0, 32], sizes = [8, 32], strides = [1, 1]} : vector<8x128xf32> to vector<8x32xf32>
    %cst_88 = arith.constant 0.000000e+00 : f32
    %264 = vector.broadcast %cst_88 : f32 to vector<8x32xf32>
    %265 = arith.subf %264, %263 : vector<8x32xf32>
    %266 = math.exp %265 : vector<8x32xf32>
    %cst_89 = arith.constant 1.000000e+00 : f32
    %267 = vector.broadcast %cst_89 : f32 to vector<8x32xf32>
    %268 = arith.addf %267, %266 : vector<8x32xf32>
    %cst_90 = arith.constant 1.000000e+00 : f32
    %269 = vector.broadcast %cst_90 : f32 to vector<8x32xf32>
    %270 = arith.divf %269, %268 : vector<8x32xf32>
    %271 = vector.extract_strided_slice %254 {offsets = [0, 64], sizes = [8, 32], strides = [1, 1]} : vector<8x128xf32> to vector<8x32xf32>
    %272 = math.tanh %271 : vector<8x32xf32>
    %273 = vector.extract_strided_slice %254 {offsets = [0, 96], sizes = [8, 32], strides = [1, 1]} : vector<8x128xf32> to vector<8x32xf32>
    %cst_91 = arith.constant 0.000000e+00 : f32
    %274 = vector.broadcast %cst_91 : f32 to vector<8x32xf32>
    %275 = arith.subf %274, %273 : vector<8x32xf32>
    %276 = math.exp %275 : vector<8x32xf32>
    %cst_92 = arith.constant 1.000000e+00 : f32
    %277 = vector.broadcast %cst_92 : f32 to vector<8x32xf32>
    %278 = arith.addf %277, %276 : vector<8x32xf32>
    %cst_93 = arith.constant 1.000000e+00 : f32
    %279 = vector.broadcast %cst_93 : f32 to vector<8x32xf32>
    %280 = arith.divf %279, %278 : vector<8x32xf32>
    %281 = arith.mulf %270, %249 : vector<8x32xf32>
    %282 = arith.mulf %262, %272 : vector<8x32xf32>
    %283 = arith.addf %281, %282 : vector<8x32xf32>
    %284 = math.tanh %283 : vector<8x32xf32>
    %285 = arith.mulf %280, %284 : vector<8x32xf32>
    %c0_94 = arith.constant 0 : index
    %c0_95 = arith.constant 0 : index
    %286 = vector.load %arg7[%c0_94, %c0_95] : memref<32x128xf32, #tpu.memory_space<vmem>>, vector<32x128xf32>
    %cst_96 = arith.constant dense<0.000000e+00> : vector<8x128xf32>
    %287 = tpu.matmul %285, %286, %cst_96 {dimension_numbers = #tpu.dot_dimension_numbers<[1], [0], [0], [1], [0, 0, 1, 1], [], []>} : vector<8x32xf32>, vector<32x128xf32>, vector<8x128xf32> -> vector<8x128xf32>
    %c0_97 = arith.constant 0 : index
    %c0_98 = arith.constant 0 : index
    %288 = vector.load %arg8[%c0_97, %c0_98] : memref<1x128xf32, #tpu.memory_space<vmem>>, vector<1x128xf32>
    %289 = vector.broadcast %288 : vector<1x128xf32> to vector<8x128xf32>
    %290 = arith.addf %287, %289 : vector<8x128xf32>
    %cst_99 = arith.constant dense<0.000000e+00> : vector<128xf32>
    %291 = vector.multi_reduction <add>, %290, %cst_99 [0] : vector<8x128xf32> to vector<128xf32>
    %292 = vector.shape_cast %291 : vector<128xf32> to vector<1x128xf32>
    %cst_100 = arith.constant 8.000000e+00 : f32
    %293 = vector.broadcast %cst_100 : f32 to vector<1x128xf32>
    %294 = arith.divf %292, %293 : vector<1x128xf32>
    %295 = vector.broadcast %294 : vector<1x128xf32> to vector<8x128xf32>
    %296 = arith.subf %290, %295 : vector<8x128xf32>
    %297 = arith.mulf %296, %296 : vector<8x128xf32>
    %cst_101 = arith.constant dense<0.000000e+00> : vector<128xf32>
    %298 = vector.multi_reduction <add>, %297, %cst_101 [0] : vector<8x128xf32> to vector<128xf32>
    %299 = vector.shape_cast %298 : vector<128xf32> to vector<1x128xf32>
    %cst_102 = arith.constant 8.000000e+00 : f32
    %300 = vector.broadcast %cst_102 : f32 to vector<1x128xf32>
    %301 = arith.divf %299, %300 : vector<1x128xf32>
    %302 = vector.broadcast %294 : vector<1x128xf32> to vector<8x128xf32>
    %303 = arith.subf %290, %302 : vector<8x128xf32>
    %cst_103 = arith.constant 9.99999974E-6 : f32
    %304 = vector.broadcast %cst_103 : f32 to vector<1x128xf32>
    %305 = arith.addf %301, %304 : vector<1x128xf32>
    %306 = math.rsqrt %305 : vector<1x128xf32>
    %307 = vector.broadcast %306 : vector<1x128xf32> to vector<8x128xf32>
    %308 = arith.mulf %303, %307 : vector<8x128xf32>
    %c0_104 = arith.constant 0 : index
    %c0_105 = arith.constant 0 : index
    %309 = vector.load %arg9[%c0_104, %c0_105] : memref<1x128xf32, #tpu.memory_space<vmem>>, vector<1x128xf32>
    %310 = vector.broadcast %309 : vector<1x128xf32> to vector<8x128xf32>
    %311 = arith.mulf %308, %310 : vector<8x128xf32>
    %c0_106 = arith.constant 0 : index
    %c0_107 = arith.constant 0 : index
    %312 = vector.load %arg10[%c0_106, %c0_107] : memref<1x128xf32, #tpu.memory_space<vmem>>, vector<1x128xf32>
    %313 = vector.broadcast %312 : vector<1x128xf32> to vector<8x128xf32>
    %314 = arith.addf %311, %313 : vector<8x128xf32>
    %cst_108 = arith.constant 0.000000e+00 : f32
    %315 = vector.broadcast %cst_108 : f32 to vector<8x128xf32>
    %316 = arith.cmpf ogt, %314, %315 : vector<8x128xf32>
    %cst_109 = arith.constant 0.00999999977 : f32
    %317 = vector.broadcast %cst_109 : f32 to vector<8x128xf32>
    %318 = arith.mulf %317, %314 : vector<8x128xf32>
    %319 = arith.select %316, %314, %318 : vector<8x128xi1>, vector<8x128xf32>
    %c0_110 = arith.constant 0 : index
    %c0_111 = arith.constant 0 : index
    %320 = vector.load %arg11[%c0_110, %c0_111] : memref<1x128xf32, #tpu.memory_space<vmem>>, vector<1x128xf32>
    %321 = vector.broadcast %320 : vector<1x128xf32> to vector<8x128xf32>
    %322 = arith.mulf %319, %321 : vector<8x128xf32>
    %cst_112 = arith.constant dense<0.000000e+00> : vector<8xf32>
    %323 = vector.multi_reduction <add>, %322, %cst_112 [1] : vector<8x128xf32> to vector<8xf32>
    %324 = vector.shape_cast %323 : vector<8xf32> to vector<8x1xf32>
    %c0_113 = arith.constant 0 : index
    %c0_114 = arith.constant 0 : index
    %325 = vector.load %arg12[%c0_113, %c0_114] : memref<1x1xf32, #tpu.memory_space<vmem>>, vector<1x1xf32>
    %326 = vector.broadcast %325 : vector<1x1xf32> to vector<8x1xf32>
    %327 = arith.addf %324, %326 : vector<8x1xf32>
    %cst_115 = arith.constant dense<0.000000e+00> : vector<1xf32>
    %328 = vector.multi_reduction <add>, %327, %cst_115 [0] : vector<8x1xf32> to vector<1xf32>
    %329 = vector.shape_cast %328 : vector<1xf32> to vector<1x1xf32>
    %cst_116 = arith.constant 8.000000e+00 : f32
    %330 = vector.broadcast %cst_116 : f32 to vector<1x1xf32>
    %331 = arith.divf %329, %330 : vector<1x1xf32>
    %332 = vector.broadcast %331 : vector<1x1xf32> to vector<8x1xf32>
    %333 = arith.subf %327, %332 : vector<8x1xf32>
    %334 = arith.mulf %333, %333 : vector<8x1xf32>
    %cst_117 = arith.constant dense<0.000000e+00> : vector<1xf32>
    %335 = vector.multi_reduction <add>, %334, %cst_117 [0] : vector<8x1xf32> to vector<1xf32>
    %336 = vector.shape_cast %335 : vector<1xf32> to vector<1x1xf32>
    %cst_118 = arith.constant 8.000000e+00 : f32
    %337 = vector.broadcast %cst_118 : f32 to vector<1x1xf32>
    %338 = arith.divf %336, %337 : vector<1x1xf32>
    %339 = vector.broadcast %331 : vector<1x1xf32> to vector<8x1xf32>
    %340 = arith.subf %327, %339 : vector<8x1xf32>
    %cst_119 = arith.constant 9.99999974E-6 : f32
    %341 = vector.broadcast %cst_119 : f32 to vector<1x1xf32>
    %342 = arith.addf %338, %341 : vector<1x1xf32>
    %343 = math.rsqrt %342 : vector<1x1xf32>
    %344 = vector.broadcast %343 : vector<1x1xf32> to vector<8x1xf32>
    %345 = arith.mulf %340, %344 : vector<8x1xf32>
    %c0_120 = arith.constant 0 : index
    %c0_121 = arith.constant 0 : index
    %346 = vector.load %arg13[%c0_120, %c0_121] : memref<1x1xf32, #tpu.memory_space<vmem>>, vector<1x1xf32>
    %347 = vector.broadcast %346 : vector<1x1xf32> to vector<8x1xf32>
    %348 = arith.mulf %345, %347 : vector<8x1xf32>
    %c0_122 = arith.constant 0 : index
    %c0_123 = arith.constant 0 : index
    %349 = vector.load %arg14[%c0_122, %c0_123] : memref<1x1xf32, #tpu.memory_space<vmem>>, vector<1x1xf32>
    %350 = vector.broadcast %349 : vector<1x1xf32> to vector<8x1xf32>
    %351 = arith.addf %348, %350 : vector<8x1xf32>
    %cst_124 = arith.constant 0.000000e+00 : f32
    %352 = vector.broadcast %cst_124 : f32 to vector<8x1xf32>
    %353 = arith.subf %352, %351 : vector<8x1xf32>
    %354 = math.exp %353 : vector<8x1xf32>
    %cst_125 = arith.constant 1.000000e+00 : f32
    %355 = vector.broadcast %cst_125 : f32 to vector<8x1xf32>
    %356 = arith.addf %355, %354 : vector<8x1xf32>
    %cst_126 = arith.constant 1.000000e+00 : f32
    %357 = vector.broadcast %cst_126 : f32 to vector<8x1xf32>
    %358 = arith.divf %357, %356 : vector<8x1xf32>
    %c0_127 = arith.constant 0 : index
    %c0_128 = arith.constant 0 : index
    %359 = vector.load %arg15[%c0_127, %c0_128] : memref<8x1xf32, #tpu.memory_space<vmem>>, vector<8x1xf32>
    tpu.vector_store %arg15[%c0_127, %c0_128], %358 {strides = array<i32>} : memref<8x1xf32, #tpu.memory_space<vmem>>, vector<8x1xf32>,
    return
  }
  func.func @transform_0(%arg0: i32) -> (i32, i32) {
    %c0_i32 = arith.constant 0 : i32
    %c0_i32_0 = arith.constant 0 : i32
    %c0_i32_1 = arith.constant 0 : i32
    return %c0_i32, %c0_i32_0 : i32, i32
  }
  func.func @transform_1(%arg0: i32) -> (i32, i32) {
    %c0_i32 = arith.constant 0 : i32
    %c0_i32_0 = arith.constant 0 : i32
    %c0_i32_1 = arith.constant 0 : i32
    return %c0_i32, %c0_i32_0 : i32, i32
  }
  func.func @transform_2(%arg0: i32) -> (i32, i32) {
    %c0_i32 = arith.constant 0 : i32
    %c0_i32_0 = arith.constant 0 : i32
    %c0_i32_1 = arith.constant 0 : i32
    return %c0_i32, %c0_i32_0 : i32, i32
  }
  func.func @transform_3(%arg0: i32) -> (i32, i32) {
    %c0_i32 = arith.constant 0 : i32
    %c0_i32_0 = arith.constant 0 : i32
    %c0_i32_1 = arith.constant 0 : i32
    return %c0_i32, %c0_i32_0 : i32, i32
  }
  func.func @transform_4(%arg0: i32) -> (i32, i32) {
    %c0_i32 = arith.constant 0 : i32
    %c0_i32_0 = arith.constant 0 : i32
    %c0_i32_1 = arith.constant 0 : i32
    return %c0_i32, %c0_i32_0 : i32, i32
  }
  func.func @transform_5(%arg0: i32) -> (i32, i32) {
    %c0_i32 = arith.constant 0 : i32
    %c0_i32_0 = arith.constant 0 : i32
    %c0_i32_1 = arith.constant 0 : i32
    return %c0_i32, %c0_i32_0 : i32, i32
  }
  func.func @transform_6(%arg0: i32) -> (i32, i32) {
    %c0_i32 = arith.constant 0 : i32
    %c0_i32_0 = arith.constant 0 : i32
    %c0_i32_1 = arith.constant 0 : i32
    return %c0_i32, %c0_i32_0 : i32, i32
  }
  func.func @transform_7(%arg0: i32) -> (i32, i32) {
    %c0_i32 = arith.constant 0 : i32
    %c0_i32_0 = arith.constant 0 : i32
    %c0_i32_1 = arith.constant 0 : i32
    return %c0_i32, %c0_i32_0 : i32, i32
  }
  func.func @transform_8(%arg0: i32) -> (i32, i32) {
    %c0_i32 = arith.constant 0 : i32
    %c0_i32_0 = arith.constant 0 : i32
    %c0_i32_1 = arith.constant 0 : i32
    return %c0_i32, %c0_i32_0 : i32, i32
  }
  func.func @transform_9(%arg0: i32) -> (i32, i32) {
    %c0_i32 = arith.constant 0 : i32
    %c0_i32_0 = arith.constant 0 : i32
    %c0_i32_1 = arith.constant 0 : i32
    return %c0_i32, %c0_i32_0 : i32, i32
  }
  func.func @transform_10(%arg0: i32) -> (i32, i32) {
    %c0_i32 = arith.constant 0 : i32
    %c0_i32_0 = arith.constant 0 : i32
    %c0_i32_1 = arith.constant 0 : i32
    return %c0_i32, %c0_i32_0 : i32, i32
  }
  func.func @transform_11(%arg0: i32) -> (i32, i32) {
    %c0_i32 = arith.constant 0 : i32
    %c0_i32_0 = arith.constant 0 : i32
    %c0_i32_1 = arith.constant 0 : i32
    return %c0_i32, %c0_i32_0 : i32, i32
  }
  func.func @transform_12(%arg0: i32) -> (i32, i32) {
    %c0_i32 = arith.constant 0 : i32
    %c0_i32_0 = arith.constant 0 : i32
    %c0_i32_1 = arith.constant 0 : i32
    return %c0_i32, %c0_i32_0 : i32, i32
  }
  func.func @transform_13(%arg0: i32) -> (i32, i32) {
    %c0_i32 = arith.constant 0 : i32
    %c0_i32_0 = arith.constant 0 : i32
    %c0_i32_1 = arith.constant 0 : i32
    return %c0_i32, %c0_i32_0 : i32, i32
  }
  func.func @transform_14(%arg0: i32) -> (i32, i32) {
    %c0_i32 = arith.constant 0 : i32
    %c0_i32_0 = arith.constant 0 : i32
    %c0_i32_1 = arith.constant 0 : i32
    return %c0_i32, %c0_i32_0 : i32, i32
  }
}

</mosaic_0001>

<bundles_post_ra>
// kernel: tpu_custom_call.1
= control target key start
LH: loop header
LB: loop body
LE: loop exit
PB: predicated region body
PF: predicated region fallthrough
CT: control target
= control target key end

     0   :  { %s2167_s0 = inlined_call_operand.vmem [shape: f32[64,2], index: 0, kind: input, shape index: {}]   ;;  %s2168_s1 = inlined_call_operand.hbm [shape: f32[2,32], index: 1, kind: input, shape index: {}]   ;;  %s2169_s2 = inlined_call_operand.hbm [shape: f32[1,32], index: 2, kind: input, shape index: {}]   ;;  %s2170_s3 = inlined_call_operand.vmem [shape: f32[32,128], index: 3, kind: input, shape index: {}]   ;;  %s2171_s4 = inlined_call_operand.hbm [shape: f32[1,128], index: 4, kind: input, shape index: {}]   ;;  %s2172_s5 = inlined_call_operand.vmem [shape: f32[32,128], index: 5, kind: input, shape index: {}]   ;;  %s2173_s6 = inlined_call_operand.vmem [shape: f32[32,128], index: 6, kind: input, shape index: {}]   ;;  %s2174_s7 = inlined_call_operand.vmem [shape: f32[1,128], index: 7, kind: input, shape index: {}]   ;;  %s2175_s8 = inlined_call_operand.vmem [shape: f32[1,128], index: 8, kind: input, shape index: {}]   ;;  %s2176_s9 = inlined_call_operand.vmem [shape: f32[1,128], index: 9, kind: input, shape index: {}]   ;;  %s2177_s10 = inlined_call_operand.vmem [shape: f32[1,128], index: 10, kind: input, shape index: {}]   ;;  %s2178_s11 = inlined_call_operand.<no memory space> [shape: f32[1,1], index: 11, kind: input, shape index: {}]   ;;  %s2179_s14 = inlined_call_operand.vmem [shape: f32[8,1], index: 14, kind: output, shape index: {}]   ;;  %s2180_s12 = inlined_call_operand.<no memory space> [shape: f32[1,1], index: 12, kind: input, shape index: {}]   ;;  %s2181_s13 = inlined_call_operand.<no memory space> [shape: f32[1,1], index: 13, kind: input, shape index: {}]  }
   0x1   :  { %v19_v0 = vstv %s2178_s11  ;;  %v21_v1 = vstv %s2180_s12  ;;  %v23_v2 = vstv %s2181_s13 }
   0x2   :  { %20 = vst [vmem:[#allocation2] sm:$0x1] %v19_v0  ;;  %22 = vst [vmem:[#allocation3] sm:$0x1] %v21_v1 }
   0x3   :  { %24 = vst [vmem:[#allocation4] sm:$0x1] %v23_v2 }
   0x4   :  { %25 = vsyncpa [#allocation6], 0 }
   0x5   :  { %26 = vsyncpa [#allocation8], 0  ;;  %s1820_s19 = smov [#allocation7]   ;;  %s1821_s21 = smov [#allocation5]  }
   0x6   :  { %s45_s20 = sshll.u32 %s1820_s19, 4  ;;  %s35_s22 = sshll.u32 %s1821_s21, 4  ;;  %s46_s20 = int_to_ptr.vmem [resolvable:$true] %s45_s20  ;;  %s36_s22 = int_to_ptr.vmem [resolvable:$true] %s35_s22 }
   0x7   :  { %s1750_s24 = scalar_lea.hbm %s2169_s2, 16 }
   0x8   :  { %p1751_p0 = scmp.ne.s32.totalorder %s2169_s2, %s1750_s24  ;;  %p1754_p1 = scmp.lt.u32.totalorder %s1750_s24, %s2169_s2 }
   0xa   :  { %p1756_p2 = pnand %p1754_p1, %p1751_p0 }
   0xc   :  { %1759 = shalt.err (!%p1756_p2)
}
   0xd   :  { %s1760_s27 = scalar_lea.vmem %s46_s20, 16  ;;  %s1764_s28 = scalar_lea.vmem %s46_s20, 32 }
   0xe   :  { %p1761_p3 = scmp.ne.s32.totalorder %s46_s20, %s1760_s27  ;;  %p1765_p4 = scmp.lt.s32.totalorder %s46_s20, %s46_s20 }
   0xf   :  { %p1766_p5 = scmp.lt.s32.totalorder %s1764_s28, %s1760_s27 }
  0x11   :  { %p1767_p6 = por %p1766_p5, %p1765_p4 }
  0x13   :  { %p1768_p7 = pnand %p1767_p6, %p1761_p3 }
  0x15   :  { %1771 = shalt.err (!%p1768_p7)
}
  0x16   :  { %48 = dma.hbm_to_vmem [thread:$0]  %s2169_s2, 16, %s46_s20, [#allocation8]  }
  0x17   :  { %s1772_s17 = scalar_lea.hbm %s2168_s1, 32 }
  0x18   :  { %p1773_p8 = scmp.ne.s32.totalorder %s2168_s1, %s1772_s17  ;;  %p1776_p9 = scmp.lt.u32.totalorder %s1772_s17, %s2168_s1 }
  0x1a   :  { %p1778_p10 = pnand %p1776_p9, %p1773_p8 }
  0x1c   :  { %1781 = shalt.err (!%p1778_p10)
}
  0x1d   :  { %s1782_s23 = scalar_lea.vmem %s36_s22, 32  ;;  %p1787_p12 = scmp.lt.s32.totalorder %s36_s22, %s36_s22 }
  0x1e   :  { %p1783_p11 = scmp.ne.s32.totalorder %s36_s22, %s1782_s23  ;;  %p1788_p13 = scmp.lt.s32.totalorder %s1782_s23, %s1782_s23 }
  0x20   :  { %p1789_p0 = por %p1788_p13, %p1787_p12 }
  0x22   :  { %p1790_p1 = pnand %p1789_p0, %p1783_p11 }
  0x24   :  { %1793 = shalt.err (!%p1790_p1)
}
  0x25   :  { %38 = dma.hbm_to_vmem [thread:$0]  %s2168_s1, 32, %s36_s22, [#allocation6]  }
  0x26   :  { %s1822_s24 = smov [#allocation9]   ;;  %s1794_s26 = scalar_lea.hbm %s2171_s4, 16 }
  0x27   :  { %s57_s12 = sshll.u32 %s1822_s24, 4  ;;  %p1795_p2 = scmp.ne.s32.totalorder %s2171_s4, %s1794_s26  ;;  %s58_s12 = int_to_ptr.vmem [resolvable:$true] %s57_s12 }
  0x28   :  { %p1798_p3 = scmp.lt.u32.totalorder %s1794_s26, %s2171_s4 }
  0x2a   :  { %p1800_p4 = pnand %p1798_p3, %p1795_p2 }
  0x2c   :  { %1803 = shalt.err (!%p1800_p4)
}
  0x2d   :  { %s1804_s15 = scalar_lea.vmem %s58_s12, 16  ;;  %s1808_s1 = scalar_lea.vmem %s58_s12, 32 }
  0x2e   :  { %p1805_p5 = scmp.ne.s32.totalorder %s58_s12, %s1804_s15  ;;  %p1809_p6 = scmp.lt.s32.totalorder %s58_s12, %s58_s12 }
  0x2f   :  { %p1810_p7 = scmp.lt.s32.totalorder %s1808_s1, %s1804_s15 }
  0x31   :  { %p1811_p8 = por %p1810_p7, %p1809_p6 }
  0x33   :  { %p1812_p9 = pnand %p1811_p8, %p1805_p5 }
  0x35   :  { %1815 = shalt.err (!%p1812_p9)
}
  0x36   :  { %60 = dma.hbm_to_vmem [thread:$0]  %s2171_s4, 16, %s58_s12, [#allocation8]  }
  0x37   :  { %1816 = dma.done.wait [#allocation6], 32  }
  0x38   :  { %1817 = vsyncadd [#allocation6], 4294967264 }
  0x39   :  { %1818 = dma.done.wait [#allocation8], 32  }
  0x3a   :  { %1819 = vsyncadd [#allocation8], 4294967264  ;;  %vm129_vm0 = vcmask 1041408   ;;  %vm104_vm1 = vcmask 15360   ;;  %v96_v3 = vld [vmem:[#allocation5] sm:$0x3] }
  0x3b   :  { %v88_v4 = vld [vmem:[%s2167_s0] sm:$0xff]  ;;  %v89_v5 = vld [vmem:[%s2167_s0 + $0x8] sm:$0xff]  ;;  %1475 = vmatprep.subr.msk.mxu0 %vm129_vm0, %v96_v3  ;;  %v90_v6 = vld [vmem:[%s2167_s0 + $0x10] sm:$0xff]  ;;  %v1823_v10 = vmov 0.0|0.0   ;;  %vm1824_vm2 = vmmov 0   ;;  %v1825_v25 = vmov 0.0  }
  0x3c   :  { %1477 = vmatprep.mubr.msk.f32.mxu0 %vm104_vm1, %v88_v4  ;;  %v379_v7 = vld [vmem:[%s2172_s5] sm:$0xff]  ;;  %v380_v8 = vld [vmem:[%s2172_s5 + $0x8] sm:$0xff]  ;;  %1476 = vmatpush3.msk.msra.mxu0 %vm129_vm0, %v96_v3  ;;  %v91_v13 = vld [vmem:[%s2167_s0 + $0x18] sm:$0xff]  ;;  %vm249_vm3 = vcmask 261120   ;;  %vm1324_vm5 = vcmask 7168  }
  0x3d   :  { %v1964_v9 = vpack.c.bf16 %v380_v8, %v379_v7  ;;  %1478 = vmatmul.mubr.msk.f32.vlgmr.msra.gmra.mrb[0].mxu0 %vm104_vm1, %v89_v5  ;;  %1616 = vmatprep.subr.bf16.mxu0 %v1823_v10  ;;  %v238_v11 = vld [vmem:[%s2170_s3] sm:$0xff]  ;;  %v239_v12 = vld [vmem:[%s2170_s3 + $0x8] sm:$0xff]  ;;  %v240_v17 = vld [vmem:[%s2170_s3 + $0x10] sm:$0xff] }
  0x3e   :  { %1480 = vmatprep.mubr.msk.f32.mxu0 %vm104_vm1, %v90_v6  ;;  %v1608_v14 = vpack.c.bf16 %v239_v12, %v238_v11  ;;  %v92_v15 = vld [vmem:[%s2167_s0 + $0x20] sm:$0xff]  ;;  %v93_v16 = vld [vmem:[%s2167_s0 + $0x28] sm:$0xff]  ;;  %v241_v18 = vld [vmem:[%s2170_s3 + $0x18] sm:$0xff]  ;;  %s1827_s3 = smov 32  }
  0x3f   :  { %1618 = vmatpush3.bf16.msra.mxu0 %v1964_v9  ;;  %v94_v19 = vld [vmem:[%s2167_s0 + $0x30] sm:$0xff]  ;;  %v1612_v20 = vpack.c.bf16 %v241_v18, %v240_v17  ;;  %v95_v21 = vld [vmem:[%s2167_s0 + $0x38] sm:$0xff]  ;;  %v1375_v26 = vld [vmem:[#allocation7] ss:$0 sm:$0xff]  ;;  %s1826_s0 = smov 64  }
  0x40   :  { %1619 = vmatprep.subr.bf16.mxu0 %v1823_v10  ;;  %1609 = vmatprep.subr.bf16.mxu1 %v1608_v14  ;;  %v381_v22 = vld [vmem:[%s2172_s5 + $0x10] sm:$0xff]  ;;  %v382_v23 = vld [vmem:[%s2172_s5 + $0x18] sm:$0xff]  ;;  %v2037_v45 = vld [vmem:[#allocation9] ss:$0 sm:$0xff] }
  0x41   :  { %1481 = vmatmul.mubr.msk.f32.gmra.mrb[2].mxu0 %vm104_vm1, %v91_v13  ;;  %1611 = vmatpush3.bf16.msra.mxu1 %v1608_v14  ;;  %v2009_v24 = vpack.c.bf16 %v382_v23, %v381_v22 }
  0x42   :  { %1483 = vmatprep.mubr.msk.f32.mxu0 %vm104_vm1, %v92_v15  ;;  %1613 = vmatprep.subr.bf16.mxu1 %v1612_v20 }
  0x43   :  { %1621 = vmatpush3.bf16.msra.mxu0 %v2009_v24 }
  0x44   :  { %1628 = vmatprep.subr.bf16.mxu0 %v1823_v10 }
  0x45   :  { %1484 = vmatmul.mubr.msk.f32.gmra.mrb[4].mxu0 %vm104_vm1, %v93_v16  ;;  %1615 = vmatpush3.bf16.msra.mxu1 %v1612_v20 }
  0x46   :  { %1486 = vmatprep.mubr.msk.f32.mxu0 %vm104_vm1, %v94_v19  ;;  %1622 = vmatprep.subr.bf16.mxu1 %v1823_v10 }
  0x49   :  { %1487 = vmatmul.mubr.msk.f32.gmra.mrb[6].mxu0 %vm104_vm1, %v95_v21 }
  0x4a   :  { %1517 = vmatprep.mubr.msk.f32.mxu0 %vm1824_vm2, %v1825_v25 }
  0x4d   :  { %1518 = vmatmul.mubr.f32.vlgmr.msra.gmra.mrb[8].mxu0 %v1825_v25 }
  0x4e   :  { %1630 = vmatpush3.bf16.msra.mxu0 %v1964_v9  ;;  %1539 = vmatprep.mubr.msk.f32.mxu0 %vm1824_vm2, %v1825_v25 }
  0x4f   :  { %1631 = vmatprep.subr.bf16.mxu0 %v1823_v10 }
  0x52   :  { %1633 = vmatpush3.bf16.msra.mxu0 %v2009_v24 }
  0x53   :  { %1640 = vmatprep.subr.bf16.mxu0 %v1823_v10 }
 0x110   :  { %v1479_v27 = vpop.f32.mrb[0].mxu0 }
 0x111   :  { %v199_v28 = vpop.f32.mrb[1].mxu0  ;;  %v205_v30 = vadd.f32 %v1479_v27, %v1375_v26 }
 0x112   :  { %v200_v29 = vadd.f32 %v1375_v26, %v199_v28 }
 0x114   :  { %1497 = vmatprep.mubr.msk.f32.mxu1 %vm249_vm3, %v200_v29  ;;  %v1482_v31 = vpop.f32.mrb[2].mxu0 }
 0x115   :  { %1498 = vmatmul.mubr.msk.f32.vlgmr.msra.gmra.mrb[0].mxu1 %vm249_vm3, %v205_v30  ;;  %v215_v32 = vadd.f32 %v1482_v31, %v1375_v26  ;;  %v209_v33 = vpop.f32.mrb[3].mxu0 }
 0x116   :  { %v210_v34 = vadd.f32 %v1375_v26, %v209_v33  ;;  %1624 = vmatpush3.bf16.msra.mxu1 %v1964_v9 }
 0x117   :  { %1625 = vmatprep.subr.bf16.mxu1 %v1823_v10 }
 0x118   :  { %v1485_v35 = vpop.f32.mrb[4].mxu0  ;;  %1500 = vmatprep.mubr.msk.f32.mxu1 %vm249_vm3, %v210_v34 }
 0x119   :  { %v225_v36 = vadd.f32 %v1485_v35, %v1375_v26  ;;  %v219_v37 = vpop.f32.mrb[5].mxu0  ;;  %1501 = vmatmul.mubr.msk.f32.gmra.mrb[2].mxu1 %vm249_vm3, %v215_v32 }
 0x11a   :  { %v220_v38 = vadd.f32 %v1375_v26, %v219_v37  ;;  %1627 = vmatpush3.bf16.msra.mxu1 %v2009_v24 }
 0x11b   :  { %1634 = vmatprep.subr.bf16.mxu1 %v1823_v10 }
 0x11c   :  { %1503 = vmatprep.mubr.msk.f32.mxu1 %vm249_vm3, %v220_v38  ;;  %v1488_v39 = vpop.f32.mrb[6].mxu0 }
 0x11d   :  { %1504 = vmatmul.mubr.msk.f32.gmra.mrb[4].mxu1 %vm249_vm3, %v225_v36  ;;  %v235_v40 = vadd.f32 %v1488_v39, %v1375_v26  ;;  %v229_v41 = vpop.f32.mrb[7].mxu0 }
 0x11e   :  { %v230_v42 = vadd.f32 %v1375_v26, %v229_v41 }
 0x120   :  { %1506 = vmatprep.mubr.msk.f32.mxu1 %vm249_vm3, %v230_v42  ;;  %v452_v43 = vpop.f32.mrb[8].mxu0 }
 0x121   :  { %1507 = vmatmul.mubr.msk.f32.gmra.mrb[6].mxu1 %vm249_vm3, %v235_v40  ;;  %v1519_v44 = vpop.f32.mrb[9].mxu0 }
 0x122   :  { %1528 = vmatprep.mubr.msk.f32.mxu1 %vm1824_vm2, %v1825_v25 }
 0x1e8   :  { %v1499_v46 = vpop.f32.mrb[0].mxu1 }
 0x1e9   :  { %v340_v47 = vpop.f32.mrb[1].mxu1  ;;  %v346_v7 = vadd.f32 %v1499_v46, %v2037_v45 }
 0x1ea   :  { %v341_v48 = vadd.f32 %v2037_v45, %v340_v47 }
 0x1ec   :  { %v456_v49 = vadd.f32 %v452_v43, %v341_v48  ;;  %v2040_v50 = vpop.f32.mrb[2].mxu1 }
 0x1ed   :  { %v2042_v51 = vpop.f32.mrb[3].mxu1 }
 0x1ee   :  { %1678 = vtanh.f32 %v456_v49  ;;  %v457_v57 = vsub.f32 0.0, %v456_v49  ;;  %v351_v30 = vadd.f32 %v2037_v45, %v2042_v51  ;;  %v356_v51 = vadd.f32 %v2040_v50, %v2037_v45 }
 0x1f0   :  { %v2044_v52 = vpop.f32.mrb[4].mxu1  ;;  %v458_v58 = vmul.f32 1.442695, %v457_v57 }
 0x1f1   :  { %v2046_v53 = vpop.f32.mrb[5].mxu1 }
 0x1f2   :  { %1680 = vpow2.f32 %v458_v58 }
 0x1f4   :  { %v2049_v55 = vpop.f32.mrb[6].mxu1 }
 0x1f5   :  { %v2051_v56 = vpop.f32.mrb[7].mxu1 }
 0x1f8   :  { %v1679_v54 = vpop.eup %1678 }
 0x1f9   :  { %466 = vrot.lane.b32.xlu0 %v1679_v54, %s1826_s0 }
 0x1fc   :  { %v1681_v59 = vpop.eup %1680 }
 0x1fd   :  { %v460_v60 = vadd.f32 1.0, %v1681_v59 }
 0x1ff   :  { %1682 = vrcp.f32 %v460_v60 }
 0x209   :  { %v1683_v61 = vpop.eup %1682 }
 0x20a   :  { %v464_v0 = vmul.f32 0.0, %v1683_v61 }
 0x26b   :  { %v467_v62 = vpop.permute.xlu0 %466 }
 0x26c   :  { %v469_v63 = vmul.f32 %v1683_v61, %v467_v62 }
 0x26e   :  { %471 = vrot.lane.b32.xlu0 %v469_v63, %s1827_s3 }
 0x2e0   :  { %v472_v1 = vpop.permute.xlu0 %471 }
 0x2e1   :  { %v474_v2 = vadd.f32 %v472_v1, %v464_v0 }
 0x2e3   :  { %1684 = vtanh.f32 %v474_v2 }
 0x2ed   :  { %v1685_v3 = vpop.eup %1684 }
 0x2ee   :  { %477 = vrot.lane.b32.xlu1 %v1685_v3, %s1826_s0 }
 0x360   :  { %v478_v4 = vpop.permute.xlu1 %477 }
 0x361   :  { %v480_v5 = vmul.f32 %v1683_v61, %v478_v4 }
 0x363   :  { %482 = vrot.lane.b32.xlu1 %v480_v5, %s1827_s3 }
 0x3d5   :  { %v483_v6 = vpop.permute.xlu1 %482 }
 0x3d6   :  { %1529 = vmatmul.mubr.msk.f32.vlgmr.msra.gmra.mrb[8].mxu1 %vm249_vm3, %v483_v6 }
 0x3d7   :  { %1636 = vmatpush3.bf16.msra.mxu1 %v1964_v9  ;;  %1550 = vmatprep.mubr.msk.f32.mxu1 %vm1824_vm2, %v1825_v25 }
 0x3d8   :  { %1637 = vmatprep.subr.bf16.mxu1 %v1823_v10 }
 0x3db   :  { %1639 = vmatpush3.bf16.msra.mxu1 %v2009_v24 }
 0x3dc   :  { %1646 = vmatprep.subr.bf16.mxu1 %v1823_v10 }
 0x4a9   :  { %v552_v8 = vpop.f32.mrb[8].mxu1 }
 0x4aa   :  { %v556_v11 = vadd.f32 %v552_v8, %v346_v7  ;;  %v1530_v12 = vpop.f32.mrb[9].mxu1 }
 0x4ac   :  { %1686 = vtanh.f32 %v556_v11  ;;  %v557_v14 = vsub.f32 0.0, %v556_v11  ;;  %v361_v11 = vadd.f32 %v2037_v45, %v2046_v53 }
 0x4ae   :  { %v558_v15 = vmul.f32 1.442695, %v557_v14 }
 0x4b0   :  { %1688 = vpow2.f32 %v558_v15 }
 0x4b6   :  { %v1687_v13 = vpop.eup %1686 }
 0x4b7   :  { %566 = vrot.lane.b32.xlu0 %v1687_v13, %s1826_s0 }
 0x4ba   :  { %v1689_v16 = vpop.eup %1688 }
 0x4bb   :  { %v560_v17 = vadd.f32 1.0, %v1689_v16 }
 0x4bd   :  { %1690 = vrcp.f32 %v560_v17 }
 0x4c7   :  { %v1691_v18 = vpop.eup %1690 }
 0x4c8   :  { %v564_v21 = vmul.f32 %v1691_v18, %v474_v2 }
 0x529   :  { %v567_v19 = vpop.permute.xlu0 %566 }
 0x52a   :  { %v569_v20 = vmul.f32 %v1691_v18, %v567_v19 }
 0x52c   :  { %571 = vrot.lane.b32.xlu1 %v569_v20, %s1827_s3 }
 0x59e   :  { %v572_v22 = vpop.permute.xlu1 %571 }
 0x59f   :  { %v574_v23 = vadd.f32 %v572_v22, %v564_v21 }
 0x5a1   :  { %1692 = vtanh.f32 %v574_v23 }
 0x5ab   :  { %v1693_v26 = vpop.eup %1692 }
 0x5ac   :  { %577 = vrot.lane.b32.xlu0 %v1693_v26, %s1826_s0 }
 0x61e   :  { %v578_v27 = vpop.permute.xlu0 %577 }
 0x61f   :  { %v580_v28 = vmul.f32 %v1691_v18, %v578_v27 }
 0x621   :  { %582 = vrot.lane.b32.xlu1 %v580_v28, %s1827_s3 }
 0x693   :  { %v583_v29 = vpop.permute.xlu1 %582 }
 0x694   :  { %1540 = vmatmul.mubr.msk.f32.vlgmr.msra.gmra.mrb[10].mxu0 %vm249_vm3, %v583_v29 }
 0x695   :  { %1642 = vmatpush3.bf16.msra.mxu0 %v1964_v9  ;;  %1561 = vmatprep.mubr.msk.f32.mxu0 %vm1824_vm2, %v1825_v25 }
 0x696   :  { %1643 = vmatprep.subr.bf16.mxu0 %v1823_v10 }
 0x699   :  { %1645 = vmatpush3.bf16.msra.mxu0 %v2009_v24 }
 0x69a   :  { %1652 = vmatprep.subr.bf16.mxu0 %v1823_v10 }
 0x767   :  { %v652_v31 = vpop.f32.mrb[10].mxu0 }
 0x768   :  { %v656_v32 = vadd.f32 %v652_v31, %v351_v30  ;;  %v1541_v33 = vpop.f32.mrb[11].mxu0  ;;  %v366_v31 = vadd.f32 %v2044_v52, %v2037_v45 }
 0x76a   :  { %1694 = vtanh.f32 %v656_v32  ;;  %v657_v35 = vsub.f32 0.0, %v656_v32 }
 0x76c   :  { %v658_v36 = vmul.f32 1.442695, %v657_v35 }
 0x76e   :  { %1696 = vpow2.f32 %v658_v36 }
 0x774   :  { %v1695_v34 = vpop.eup %1694 }
 0x775   :  { %666 = vrot.lane.b32.xlu0 %v1695_v34, %s1826_s0 }
 0x778   :  { %v1697_v37 = vpop.eup %1696 }
 0x779   :  { %v660_v38 = vadd.f32 1.0, %v1697_v37 }
 0x77b   :  { %1698 = vrcp.f32 %v660_v38 }
 0x785   :  { %v1699_v39 = vpop.eup %1698 }
 0x786   :  { %v664_v42 = vmul.f32 %v1699_v39, %v574_v23 }
 0x7e7   :  { %v667_v40 = vpop.permute.xlu0 %666 }
 0x7e8   :  { %v669_v41 = vmul.f32 %v1699_v39, %v667_v40 }
 0x7ea   :  { %671 = vrot.lane.b32.xlu1 %v669_v41, %s1827_s3 }
 0x85c   :  { %v672_v43 = vpop.permute.xlu1 %671 }
 0x85d   :  { %v674_v44 = vadd.f32 %v672_v43, %v664_v42 }
 0x85f   :  { %1700 = vtanh.f32 %v674_v44 }
 0x869   :  { %v1701_v46 = vpop.eup %1700 }
 0x86a   :  { %677 = vrot.lane.b32.xlu0 %v1701_v46, %s1826_s0 }
 0x8dc   :  { %v678_v47 = vpop.permute.xlu0 %677 }
 0x8dd   :  { %v680_v48 = vmul.f32 %v1699_v39, %v678_v47 }
 0x8df   :  { %682 = vrot.lane.b32.xlu1 %v680_v48, %s1827_s3  ;;  %v371_v48 = vadd.f32 %v2037_v45, %v2051_v56 }
 0x951   :  { %v683_v49 = vpop.permute.xlu1 %682 }
 0x952   :  { %1551 = vmatmul.mubr.msk.f32.vlgmr.msra.gmra.mrb[10].mxu1 %vm249_vm3, %v683_v49 }
 0x953   :  { %1648 = vmatpush3.bf16.msra.mxu1 %v1964_v9  ;;  %1572 = vmatprep.mubr.msk.f32.mxu1 %vm1824_vm2, %v1825_v25 }
 0x954   :  { %1649 = vmatprep.subr.bf16.mxu1 %v1823_v10 }
 0x957   :  { %1651 = vmatpush3.bf16.msra.mxu1 %v2009_v24 }
 0x958   :  { %1658 = vmatprep.subr.bf16.mxu1 %v1823_v10 }
 0xa25   :  { %v752_v54 = vpop.f32.mrb[10].mxu1 }
 0xa26   :  { %v756_v57 = vadd.f32 %v752_v54, %v356_v51  ;;  %v1552_v58 = vpop.f32.mrb[11].mxu1 }
 0xa28   :  { %1702 = vtanh.f32 %v756_v57  ;;  %v757_v60 = vsub.f32 0.0, %v756_v57 }
 0xa2a   :  { %v758_v61 = vmul.f32 1.442695, %v757_v60 }
 0xa2c   :  { %1704 = vpow2.f32 %v758_v61 }
 0xa32   :  { %v1703_v59 = vpop.eup %1702 }
 0xa33   :  { %766 = vrot.lane.b32.xlu0 %v1703_v59, %s1826_s0 }
 0xa36   :  { %v1705_v62 = vpop.eup %1704 }
 0xa37   :  { %v760_v63 = vadd.f32 1.0, %v1705_v62 }
 0xa39   :  { %1706 = vrcp.f32 %v760_v63 }
 0xa43   :  { %v1707_v0 = vpop.eup %1706 }
 0xa44   :  { %v764_v3 = vmul.f32 %v1707_v0, %v674_v44 }
 0xaa5   :  { %v767_v1 = vpop.permute.xlu0 %766 }
 0xaa6   :  { %v769_v2 = vmul.f32 %v1707_v0, %v767_v1 }
 0xaa8   :  { %771 = vrot.lane.b32.xlu1 %v769_v2, %s1827_s3 }
 0xb1a   :  { %v772_v50 = vpop.permute.xlu1 %771 }
 0xb1b   :  { %v774_v4 = vadd.f32 %v772_v50, %v764_v3 }
 0xb1d   :  { %1708 = vtanh.f32 %v774_v4 }
 0xb27   :  { %v1709_v5 = vpop.eup %1708 }
 0xb28   :  { %777 = vrot.lane.b32.xlu0 %v1709_v5, %s1826_s0  ;;  %v376_v5 = vadd.f32 %v2049_v55, %v2037_v45 }
 0xb9a   :  { %v778_v6 = vpop.permute.xlu0 %777 }
 0xb9b   :  { %v780_v7 = vmul.f32 %v1707_v0, %v778_v6 }
 0xb9d   :  { %782 = vrot.lane.b32.xlu1 %v780_v7, %s1827_s3 }
 0xc0f   :  { %v783_v8 = vpop.permute.xlu1 %782 }
 0xc10   :  { %1562 = vmatmul.mubr.msk.f32.vlgmr.msra.gmra.mrb[12].mxu0 %vm249_vm3, %v783_v8 }
 0xc11   :  { %1654 = vmatpush3.bf16.msra.mxu0 %v1964_v9  ;;  %1583 = vmatprep.mubr.msk.f32.mxu0 %vm1824_vm2, %v1825_v25 }
 0xc12   :  { %1655 = vmatprep.subr.bf16.mxu0 %v1823_v10 }
 0xc15   :  { %1657 = vmatpush3.bf16.msra.mxu0 %v2009_v24 }
 0xc16   :  { %1664 = vmatprep.subr.bf16.mxu0 %v1823_v10 }
 0xce3   :  { %v852_v12 = vpop.f32.mrb[12].mxu0 }
 0xce4   :  { %v856_v13 = vadd.f32 %v852_v12, %v361_v11  ;;  %v1563_v14 = vpop.f32.mrb[13].mxu0 }
 0xce6   :  { %1710 = vtanh.f32 %v856_v13  ;;  %v857_v16 = vsub.f32 0.0, %v856_v13 }
 0xce8   :  { %v858_v17 = vmul.f32 1.442695, %v857_v16 }
 0xcea   :  { %1712 = vpow2.f32 %v858_v17 }
 0xcf0   :  { %v1711_v15 = vpop.eup %1710 }
 0xcf1   :  { %866 = vrot.lane.b32.xlu0 %v1711_v15, %s1826_s0 }
 0xcf4   :  { %v1713_v18 = vpop.eup %1712 }
 0xcf5   :  { %v860_v19 = vadd.f32 1.0, %v1713_v18 }
 0xcf7   :  { %1714 = vrcp.f32 %v860_v19 }
 0xd01   :  { %v1715_v20 = vpop.eup %1714 }
 0xd02   :  { %v864_v23 = vmul.f32 %v1715_v20, %v774_v4 }
 0xd63   :  { %v867_v21 = vpop.permute.xlu0 %866 }
 0xd64   :  { %v869_v22 = vmul.f32 %v1715_v20, %v867_v21  ;;  %v1182_v21 = vld [vmem:[%s2173_s6 + $0x8] sm:$0xff] }
 0xd66   :  { %871 = vrot.lane.b32.xlu1 %v869_v22, %s1827_s3  ;;  %v1183_v22 = vld [vmem:[%s2173_s6 + $0x10] sm:$0xff] }
 0xdd8   :  { %v872_v53 = vpop.permute.xlu1 %871 }
 0xdd9   :  { %v874_v26 = vadd.f32 %v872_v53, %v864_v23  ;;  %v1184_v53 = vld [vmem:[%s2173_s6 + $0x18] sm:$0xff] }
 0xddb   :  { %1716 = vtanh.f32 %v874_v26 }
 0xde5   :  { %v1717_v27 = vpop.eup %1716 }
 0xde6   :  { %877 = vrot.lane.b32.xlu0 %v1717_v27, %s1826_s0 }
 0xe58   :  { %v878_v28 = vpop.permute.xlu0 %877 }
 0xe59   :  { %v880_v29 = vmul.f32 %v1715_v20, %v878_v28  ;;  %v1181_v20 = vld [vmem:[%s2173_s6] sm:$0xff] }
 0xe5a   :  { %v1665_v23 = vpack.c.bf16 %v1182_v21, %v1181_v20  ;;  %v1407_v20 = vld [vmem:[#allocation3] ss:$0 sm:$0xff] }
 0xe5b   :  { %882 = vrot.lane.b32.xlu1 %v880_v29, %s1827_s3 }
 0xecd   :  { %v883_v30 = vpop.permute.xlu1 %882 }
 0xece   :  { %1573 = vmatmul.mubr.msk.f32.vlgmr.msra.gmra.mrb[12].mxu1 %vm249_vm3, %v883_v30 }
 0xecf   :  { %1660 = vmatpush3.bf16.msra.mxu1 %v1964_v9  ;;  %1594 = vmatprep.mubr.msk.f32.mxu1 %vm1824_vm2, %v1825_v25 }
 0xed0   :  { %1661 = vmatprep.subr.bf16.mxu1 %v1823_v10 }
 0xed3   :  { %1663 = vmatpush3.bf16.msra.mxu1 %v2009_v24 }
 0xfa1   :  { %v952_v32 = vpop.f32.mrb[12].mxu1 }
 0xfa2   :  { %v956_v33 = vadd.f32 %v952_v32, %v366_v31  ;;  %v1574_v34 = vpop.f32.mrb[13].mxu1  ;;  %v1401_v31 = vld [vmem:[%s2174_s7] ss:$0 sm:$0xff] }
 0xfa4   :  { %1718 = vtanh.f32 %v956_v33  ;;  %v957_v36 = vsub.f32 0.0, %v956_v33 }
 0xfa6   :  { %v958_v37 = vmul.f32 1.442695, %v957_v36 }
 0xfa8   :  { %1720 = vpow2.f32 %v958_v37 }
 0xfae   :  { %v1719_v35 = vpop.eup %1718 }
 0xfaf   :  { %966 = vrot.lane.b32.xlu0 %v1719_v35, %s1826_s0 }
 0xfb2   :  { %v1721_v9 = vpop.eup %1720 }
 0xfb3   :  { %v960_v38 = vadd.f32 1.0, %v1721_v9 }
 0xfb5   :  { %1722 = vrcp.f32 %v960_v38 }
 0xfbf   :  { %v1723_v39 = vpop.eup %1722 }
 0xfc0   :  { %v964_v24 = vmul.f32 %v1723_v39, %v874_v26  ;;  %v1668_v26 = vpack.c.bf16 %v1184_v53, %v1183_v22  ;;  %v1408_v22 = vld [vmem:[#allocation4] ss:$0 sm:$0xff] }
0x1021   :  { %v967_v40 = vpop.permute.xlu0 %966 }
0x1022   :  { %v969_v41 = vmul.f32 %v1723_v39, %v967_v40 }
0x1024   :  { %971 = vrot.lane.b32.xlu1 %v969_v41, %s1827_s3 }
0x1096   :  { %v972_v52 = vpop.permute.xlu1 %971 }
0x1097   :  { %v974_v42 = vadd.f32 %v972_v52, %v964_v24 }
0x1099   :  { %1724 = vtanh.f32 %v974_v42 }
0x10a3   :  { %v1725_v43 = vpop.eup %1724 }
0x10a4   :  { %977 = vrot.lane.b32.xlu0 %v1725_v43, %s1826_s0 }
0x1116   :  { %v978_v44 = vpop.permute.xlu0 %977 }
0x1117   :  { %v980_v46 = vmul.f32 %v1723_v39, %v978_v44 }
0x1119   :  { %982 = vrot.lane.b32.xlu1 %v980_v46, %s1827_s3 }
0x118b   :  { %v983_v47 = vpop.permute.xlu1 %982 }
0x118c   :  { %1584 = vmatmul.mubr.msk.f32.vlgmr.msra.gmra.mrb[14].mxu0 %vm249_vm3, %v983_v47 }
0x118d   :  { %1605 = vmatprep.mubr.msk.f32.mxu0 %vm1824_vm2, %v1825_v25  ;;  %1666 = vmatpush3.bf16.msra.mxu0 %v1665_v23 }
0x118e   :  { %1667 = vmatprep.subr.bf16.mxu0 %v1823_v10 }
0x1191   :  { %1669 = vmatpush3.bf16.msra.mxu0 %v1668_v26 }
0x125f   :  { %v1052_v49 = vpop.f32.mrb[14].mxu0 }
0x1260   :  { %v1056_v51 = vadd.f32 %v1052_v49, %v371_v48  ;;  %v1585_v54 = vpop.f32.mrb[15].mxu0 }
0x1262   :  { %1726 = vtanh.f32 %v1056_v51  ;;  %v1057_v58 = vsub.f32 0.0, %v1056_v51  ;;  %v1403_v51 = vld [vmem:[%s2175_s8] ss:$0 sm:$0xff] }
0x1264   :  { %v1058_v59 = vmul.f32 1.442695, %v1057_v58 }
0x1266   :  { %1728 = vpow2.f32 %v1058_v59 }
0x126c   :  { %v1727_v57 = vpop.eup %1726 }
0x126d   :  { %1066 = vrot.lane.b32.xlu0 %v1727_v57, %s1826_s0  ;;  %v1404_v57 = vld [vmem:[%s2176_s9] ss:$0 sm:$0xff] }
0x1270   :  { %v1729_v60 = vpop.eup %1728 }
0x1271   :  { %v1060_v61 = vadd.f32 1.0, %v1729_v60 }
0x1273   :  { %1730 = vrcp.f32 %v1060_v61  ;;  %v1405_v61 = vld [vmem:[%s2177_s10] ss:$0 sm:$0xff] }
0x127d   :  { %v1731_v62 = vpop.eup %1730 }
0x127e   :  { %v1064_v25 = vmul.f32 %v1731_v62, %v974_v42 }
0x12df   :  { %v1067_v63 = vpop.permute.xlu0 %1066 }
0x12e0   :  { %v1069_v0 = vmul.f32 %v1731_v62, %v1067_v63 }
0x12e2   :  { %1071 = vrot.lane.b32.xlu1 %v1069_v0, %s1827_s3  ;;  %v1406_v0 = vld [vmem:[#allocation2] ss:$0 sm:$0xff] }
0x1354   :  { %v1072_v56 = vpop.permute.xlu1 %1071 }
0x1355   :  { %v1074_v1 = vadd.f32 %v1072_v56, %v1064_v25 }
0x1357   :  { %1732 = vtanh.f32 %v1074_v1 }
0x1361   :  { %v1733_v2 = vpop.eup %1732 }
0x1362   :  { %1077 = vrot.lane.b32.xlu0 %v1733_v2, %s1826_s0 }
0x13d4   :  { %v1078_v3 = vpop.permute.xlu0 %1077 }
0x13d5   :  { %v1080_v50 = vmul.f32 %v1731_v62, %v1078_v3 }
0x13d7   :  { %1082 = vrot.lane.b32.xlu1 %v1080_v50, %s1827_s3 }
0x1449   :  { %v1083_v4 = vpop.permute.xlu1 %1082 }
0x144a   :  { %1595 = vmatmul.mubr.msk.f32.vlgmr.msra.gmra.mrb[14].mxu1 %vm249_vm3, %v1083_v4 }
0x151d   :  { %v1152_v6 = vpop.f32.mrb[14].mxu1 }
0x151e   :  { %v1156_v7 = vadd.f32 %v1152_v6, %v376_v5  ;;  %v1596_v8 = vpop.f32.mrb[15].mxu1 }
0x1520   :  { %1734 = vtanh.f32 %v1156_v7  ;;  %v1157_v12 = vsub.f32 0.0, %v1156_v7 }
0x1522   :  { %v1158_v13 = vmul.f32 1.442695, %v1157_v12 }
0x1524   :  { %1736 = vpow2.f32 %v1158_v13 }
0x152a   :  { %v1735_v11 = vpop.eup %1734 }
0x152b   :  { %1166 = vrot.lane.b32.xlu0 %v1735_v11, %s1826_s0 }
0x152e   :  { %v1737_v14 = vpop.eup %1736 }
0x152f   :  { %v1160_v15 = vadd.f32 1.0, %v1737_v14 }
0x1531   :  { %1738 = vrcp.f32 %v1160_v15 }
0x153b   :  { %v1739_v16 = vpop.eup %1738 }
0x153c   :  { %v1164_v19 = vmul.f32 %v1739_v16, %v1074_v1 }
0x159d   :  { %v1167_v17 = vpop.permute.xlu0 %1166 }
0x159e   :  { %v1169_v18 = vmul.f32 %v1739_v16, %v1167_v17 }
0x15a0   :  { %1171 = vrot.lane.b32.xlu1 %v1169_v18, %s1827_s3 }
0x1612   :  { %v1172_v45 = vpop.permute.xlu1 %1171 }
0x1613   :  { %v1174_v55 = vadd.f32 %v1172_v45, %v1164_v19 }
0x1615   :  { %1740 = vtanh.f32 %v1174_v55 }
0x161f   :  { %v1741_v27 = vpop.eup %1740 }
0x1620   :  { %1177 = vrot.lane.b32.xlu0 %v1741_v27, %s1826_s0 }
0x1692   :  { %v1178_v28 = vpop.permute.xlu0 %1177 }
0x1693   :  { %v1180_v29 = vmul.f32 %v1739_v16, %v1178_v28 }
0x1695   :  { %1193 = vrot.lane.b32.xlu1 %v1180_v29, %s1827_s3 }
0x1707   :  { %v1194_v30 = vpop.permute.xlu1 %1193 }
0x1708   :  { %1606 = vmatmul.mubr.msk.f32.vlgmr.msra.gmra.mrb[16].mxu0 %vm249_vm3, %v1194_v30 }
0x17db   :  { %v1263_v32 = vpop.f32.mrb[16].mxu0 }
0x17dc   :  { %v1264_v33 = vadd.f32 %v1401_v31, %v1263_v32  ;;  %v1607_v34 = vpop.f32.mrb[17].mxu0 }
0x17de   :  { %v1267_v35 = vrot.slane %v1264_v33, 4 }
0x17e0   :  { %v1268_v10 = vadd.f32 %v1267_v35, %v1264_v33 }
0x17e2   :  { %v1269_v36 = vrot.slane %v1268_v10, 2 }
0x17e4   :  { %v1270_v37 = vadd.f32 %v1269_v36, %v1268_v10 }
0x17e6   :  { %v1271_v9 = vrot.slane %v1270_v37, 1 }
0x17e8   :  { %v1272_v38 = vadd.f32 %v1271_v9, %v1270_v37 }
0x17ea   :  { %v1274_v39 = vmul.f32 0.125, %v1272_v38 }
0x17ec   :  { %v1275_v40 = vsub.f32 %v1264_v33, %v1274_v39 }
0x17ee   :  { %v1276_v41 = vmul.f32 %v1275_v40, %v1275_v40 }
0x17f0   :  { %v1277_v24 = vrot.slane %v1276_v41, 4 }
0x17f2   :  { %v1278_v52 = vadd.f32 %v1277_v24, %v1276_v41 }
0x17f4   :  { %v1279_v42 = vrot.slane %v1278_v52, 2 }
0x17f6   :  { %v1280_v43 = vadd.f32 %v1279_v42, %v1278_v52 }
0x17f8   :  { %v1281_v44 = vrot.slane %v1280_v43, 1 }
0x17fa   :  { %v1282_v46 = vadd.f32 %v1281_v44, %v1280_v43 }
0x17fc   :  { %v1283_v47 = vmul.f32 0.125, %v1282_v46 }
0x17fe   :  { %v1284_v48 = vadd.f32 1e-05, %v1283_v47 }
0x1800   :  { %1742 = vrsqrt.f32 %v1284_v48 }
0x180a   :  { %v1743_v49 = vpop.eup %1742 }
0x180b   :  { %v1286_v54 = vmul.f32 %v1743_v49, %v1275_v40 }
0x180d   :  { %v1294_v58 = vmul.f32 %v1403_v51, %v1286_v54 }
0x180f   :  { %v1302_v59 = vadd.f32 %v1404_v57, %v1294_v58 }
0x1811   :  { %vm1303_vm4 = vcmp.gt.f32.partialorder %v1302_v59, 0.0  ;;  %v1304_v60 = vmul.f32 0.01, %v1302_v59 }
0x1813   :  { %v1305_v62 = vsel %vm1303_vm4, %v1302_v59, %v1304_v60 }
0x1814   :  { %v1313_v63 = vmul.f32 %v1405_v61, %v1305_v62 }
0x1816   :  { %1314 = vadd.xlane.f32.xlu0 %v1313_v63 }
0x18a3   :  { %v1315_v25 = vpop.xlane.xlu0 %1314 }
0x18a4   :  { %v1323_v56 = vadd.f32 %v1406_v0, %v1315_v25 }
0x18a6   :  { %v1325_v1 = vsel %vm1324_vm5, %v1323_v56, 0.0 }
0x18a7   :  { %v1326_v2 = vrot.slane %v1325_v1, 4 }
0x18a9   :  { %v1327_v3 = vadd.f32 %v1326_v2, %v1325_v1 }
0x18ab   :  { %v1328_v50 = vrot.slane %v1327_v3, 2 }
0x18ad   :  { %v1329_v4 = vadd.f32 %v1328_v50, %v1327_v3 }
0x18af   :  { %v1330_v5 = vrot.slane %v1329_v4, 1 }
0x18b1   :  { %v1331_v6 = vadd.f32 %v1330_v5, %v1329_v4 }
0x18b3   :  { %v1332_v7 = vmul.f32 0.125, %v1331_v6 }
0x18b5   :  { %v1333_v8 = vsub.f32 %v1323_v56, %v1332_v7 }
0x18b7   :  { %v1334_v11 = vmul.f32 %v1333_v8, %v1333_v8 }
0x18b9   :  { %v1335_v12 = vsel %vm1324_vm5, %v1334_v11, 0.0 }
0x18ba   :  { %v1336_v13 = vrot.slane %v1335_v12, 4 }
0x18bc   :  { %v1337_v14 = vadd.f32 %v1336_v13, %v1335_v12 }
0x18be   :  { %v1338_v15 = vrot.slane %v1337_v14, 2 }
0x18c0   :  { %v1339_v16 = vadd.f32 %v1338_v15, %v1337_v14 }
0x18c2   :  { %v1340_v17 = vrot.slane %v1339_v16, 1 }
0x18c4   :  { %v1341_v18 = vadd.f32 %v1340_v17, %v1339_v16 }
0x18c6   :  { %v1342_v19 = vmul.f32 0.125, %v1341_v18 }
0x18c8   :  { %v1343_v45 = vadd.f32 1e-05, %v1342_v19 }
0x18ca   :  { %1744 = vrsqrt.f32 %v1343_v45 }
0x18d4   :  { %v1745_v55 = vpop.eup %1744 }
0x18d5   :  { %v1345_v21 = vmul.f32 %v1745_v55, %v1333_v8 }
0x18d7   :  { %v1353_v23 = vmul.f32 %v1407_v20, %v1345_v21 }
0x18d9   :  { %v1361_v53 = vadd.f32 %v1408_v22, %v1353_v23 }
0x18db   :  { %v1362_v26 = vsub.f32 0.0, %v1361_v53 }
0x18dd   :  { %v1363_v27 = vmul.f32 1.442695, %v1362_v26 }
0x18df   :  { %1746 = vpow2.f32 %v1363_v27 }
0x18e9   :  { %v1747_v28 = vpop.eup %1746 }
0x18ea   :  { %v1365_v29 = vadd.f32 1.0, %v1747_v28 }
0x18ec   :  { %1748 = vrcp.f32 %v1365_v29 }
0x18f6   :  { %v1749_v30 = vpop.eup %1748 }
0x18f7   :  { %1368 = vst.msk [vmem:[%s2179_s14] sm:$0xff] %vm1324_vm5, %v1749_v30 }
0x18f8   :  { %1373 = vsyncpa [#allocation6], 1 }
0x18f9   :  { %1374 = vsyncpa [#allocation8], 1 }

</bundles_post_ra>
